<compile_context>
chip_gen: v6e
topology: v6e:2x2x1
jax: 0.10.0
libtpu: 0.0.40
codegen_flags: <defaults>
</compile_context>

<pallas_src>
import functools

import jax
import jax.numpy as jnp
import numpy as np
from jax.experimental import pallas as pl
from jax.experimental.pallas import tpu as pltpu

EPS = 1e-5


def _round_up(x, m):
    return (x + m - 1) // m * m


def down_kernel(*refs, wh, hh, m, m_pad, cpad, coords_from_iota):
    if coords_from_iota:
        xp_ref, w1_ref, w2_ref, prm_ref, o_ref, patches_ref = refs
        coord_ref = None
    else:
        xp_ref, coord_ref, w1_ref, w2_ref, prm_ref, o_ref, patches_ref = refs

    # ---------------- MaxPool2d(kernel=2, stride=2) ----------------
    # Four 2x2-window taps on the leading axis -> 3 full-slab maxes.
    pooled = jnp.maximum(jnp.maximum(xp_ref[0], xp_ref[1]),
                         jnp.maximum(xp_ref[2], xp_ref[3]))        # (Cpad, Mp)

    # -------- halo-validity masks, built in-kernel (no mask DMA) ----
    if coords_from_iota:
        lane = jax.lax.broadcasted_iota(jnp.int32, (1, m_pad), 1)
        pix = jnp.bitwise_and(lane, hh * wh - 1)       # lane % (hh*wh)
        xx = jnp.bitwise_and(pix, wh - 1)              # pix % wh
    else:
        c = coord_ref[...]                             # (2, Mp) int32
        pix, xx = c[0:1, :], c[1:2, :]
    up_ok = (pix >= wh).astype(jnp.float32)            # yy >= 1
    dn_ok = (pix < (hh - 1) * wh).astype(jnp.float32)  # yy <  hh-1
    lf_ok = (xx >= 1).astype(jnp.float32)
    rt_ok = (xx < wh - 1).astype(jnp.float32)
    ymask = {-1: up_ok, 0: None, 1: dn_ok}
    xmask = {-1: lf_ok, 0: None, 1: rt_ok}
    tap_mask = {}
    for dy in (-1, 0, 1):
        for dx in (-1, 0, 1):
            my, mx = ymask[dy], xmask[dx]
            if my is None:
                tap_mask[(dy, dx)] = mx
            elif mx is None:
                tap_mask[(dy, dx)] = my
            else:
                tap_mask[(dy, dx)] = my * mx           # tiny (1, Mp) mul

    if m_pad != m:                                     # static branch
        lane_idx = jax.lax.broadcasted_iota(jnp.int32, (1, m_pad), 1)
        vmask = (lane_idx < m).astype(jnp.float32)     # keep pads out of BN
    else:
        vmask = None

    prm = prm_ref[...]                                 # (Cpad, 4): g1,be1,g2,be2

    # ---------- Conv3x3(pad=1, no bias) -> BN(batch) -> ReLU ----------
    def conv_bn_relu(src, w_ref, gamma, beta):
        y = None
        for gi, dy in enumerate((-1, 0, 1)):           # three dy-group dots
            for j, dx in enumerate((-1, 0, 1)):
                shift = (-(dy * wh + dx)) % m_pad
                tap = src if shift == 0 else pltpu.roll(src, shift, axis=1)
                msk = tap_mask[(dy, dx)]
                if msk is not None:
                    tap = tap * msk                    # zero the 1-px halo
                patches_ref[j * cpad:(j + 1) * cpad, :] = tap
            # Precision.HIGHEST retained on purpose: checked against an f32
            # reference at 1e-3; at K<=3*Cpad and 8 output rows it is noise.
            part = jnp.dot(w_ref[:, gi * 3 * cpad:(gi + 1) * 3 * cpad],
                           patches_ref[...],
                           preferred_element_type=jnp.float32,
                           precision=jax.lax.Precision.HIGHEST)
            y = part if y is None else y + part        # (Cpad, Mp)

        if vmask is not None:
            y = y * vmask                              # pads contribute 0

        # BN folded into a single affine; independent sum / sumsq reduces.
        inv_m = 1.0 / m
        mean = jnp.sum(y, axis=1, keepdims=True) * inv_m
        msq = jnp.sum(y * y, axis=1, keepdims=True) * inv_m
        var = jnp.maximum(msq - mean * mean, 0.0)      # biased variance
        scale = gamma * jax.lax.rsqrt(var + EPS)       # (Cpad, 1), EUP rsqrt
        shift = beta - mean * scale
        return jnp.maximum(y * scale + shift, 0.0)

    h1 = conv_bn_relu(pooled, w1_ref, prm[:, 0:1], prm[:, 1:2])
    h2 = conv_bn_relu(h1, w2_ref, prm[:, 2:3], prm[:, 3:4])
    o_ref[...] = h2                                    # full unmasked store


def down_forward(x_nchw, params):
    """x_nchw: (N, Cin, H, W) -> (N, Cout, H//2, W//2)."""
    w1, b1, g1, be1, w2, b2, g2, be2 = params          # conv weights in HWIO
    # Conv biases are dropped: a per-channel constant added before
    # training-mode BatchNorm is cancelled exactly by the mean subtraction.
    del b1, b2
    n, cin, h, w = x_nchw.shape
    assert h % 2 == 0 and w % 2 == 0, "MaxPool2d(2) path assumes even H, W"
    hh, wh = h // 2, w // 2
    cout = w1.shape[-1]
    m = n * hh * wh
    m_pad = _round_up(m, 128)                          # lane-aligned M
    cpad = _round_up(max(cin, cout), 8)                # sublane-aligned C

    # ---- input plumbing (one fused XLA copy):
    #      NCHW -> (4 pool taps, Cpad, M_pad) lane-dense ----
    xr = x_nchw.astype(jnp.float32).reshape(n, cin, hh, 2, wh, 2)
    xp = jnp.transpose(xr, (3, 5, 1, 0, 2, 4)).reshape(4, cin, m)
    xp = jnp.pad(xp, ((0, 0), (0, cpad - cin), (0, m_pad - m)))

    coords_from_iota = (wh & (wh - 1) == 0) and ((hh * wh) & (hh * wh - 1) == 0)
    inputs = [xp]
    if not coords_from_iota:
        # Non-power-of-two spatial dims: ship tiny int32 coords instead of
        # using vector div/mod in-kernel.
        pix = np.arange(m) % (hh * wh)
        coords = np.stack([pix, pix % wh]).astype(np.int32)       # (2, M)
        coords = np.pad(coords, ((0, 0), (0, m_pad - m)))
        inputs.append(jnp.asarray(coords))

    def flat_w(w_hwio):            # HWIO -> (Cpad, 9*Cpad), tap-major K layout
        ci, co = w_hwio.shape[2], w_hwio.shape[3]
        wp = jnp.pad(w_hwio.astype(jnp.float32),
                     ((0, 0), (0, 0), (0, cpad - ci), (0, 0)))
        wf = jnp.transpose(wp, (3, 0, 1, 2)).reshape(co, 9 * cpad)
        return jnp.pad(wf, ((0, cpad - co), (0, 0)))

    def col(v):                    # (C,) -> (Cpad,)
        return jnp.pad(v.astype(jnp.float32), (0, cpad - v.shape[0]))

    prm = jnp.stack([col(g1), col(be1), col(g2), col(be2)], axis=1)  # (Cpad,4)
    inputs += [flat_w(w1), flat_w(w2), prm]

    # VMEM residency guard (BN needs global batch stats -> single call).
    bytes_est = 4 * (xp.size
                     + (2 * m_pad if not coords_from_iota else 0)
                     + 2 * cpad * 9 * cpad + cpad * 4
                     + cpad * m_pad                    # output slab
                     + 3 * cpad * m_pad)               # im2col scratch
    assert bytes_est < 40 * 1024 * 1024, (
        "shape too large for the VMEM-resident Down kernel; needs the "
        "gridded two-pass-BN variant")

    vmem = pl.BlockSpec(memory_space=pltpu.MemorySpace.VMEM)
    out = pl.pallas_call(
        functools.partial(down_kernel, wh=wh, hh=hh, m=m, m_pad=m_pad,
                          cpad=cpad, coords_from_iota=coords_from_iota),
        out_shape=jax.ShapeDtypeStruct((cpad, m_pad), jnp.float32),
        in_specs=[vmem] * len(inputs),
        out_specs=vmem,
        scratch_shapes=[pltpu.VMEM((3 * cpad, m_pad), jnp.float32)],
        compiler_params=pltpu.CompilerParams(
            vmem_limit_bytes=int(min(48 * 1024 * 1024,
                                     max(4 * 1024 * 1024, 2 * bytes_est)))),
    )(*inputs)

    # ---- output plumbing: (Cout, N*Hh*Wh) slab -> NCHW ----
    return jnp.transpose(out[:cout, :m].reshape(cout, n, hh, wh), (1, 0, 2, 3))


def ref_forward(x_nchw, params):
    """Pure-JAX reference (same semantics as the PyTorch module, with biases)."""
    w1, b1, g1, be1, w2, b2, g2, be2 = params
    x = jnp.transpose(x_nchw, (0, 2, 3, 1)).astype(jnp.float32)
    x = jax.lax.reduce_window(x, -jnp.inf, jax.lax.max,
                              (1, 2, 2, 1), (1, 2, 2, 1), 'VALID')

    def block(x, w, b, g, be):
        y = jax.lax.conv_general_dilated(
            x, w, (1, 1), 'SAME',
            dimension_numbers=('NHWC', 'HWIO', 'NHWC'),
            precision=jax.lax.Precision.HIGHEST)
        y = y + b.reshape(1, 1, 1, -1)
        mean = jnp.mean(y, axis=(0, 1, 2), keepdims=True)
        var = jnp.mean((y - mean) ** 2, axis=(0, 1, 2), keepdims=True)
        y = (y - mean) * jax.lax.rsqrt(var + EPS)
        y = y * g.reshape(1, 1, 1, -1) + be.reshape(1, 1, 1, -1)
        return jnp.maximum(y, 0.0)

    x = block(x, w1, b1, g1, be1)
    x = block(x, w2, b2, g2, be2)
    return jnp.transpose(x, (0, 3, 1, 2))


if __name__ == "__main__":
    key = jax.random.PRNGKey(0)
    kx, k1, kb1, kg1, k2, kb2 = jax.random.split(key, 6)

    N, Cin, H, W = 2, 4, 16, 16          # Down(in_channels=4, out_channels=8)
    Cout = 8

    x = jax.random.normal(kx, (N, Cin, H, W), jnp.float32)
    w1 = jax.random.normal(k1, (3, 3, Cin, Cout), jnp.float32) * 0.2   # HWIO
    b1 = jax.random.normal(kb1, (Cout,), jnp.float32) * 0.1
    g1 = 1.0 + 0.1 * jax.random.normal(kg1, (Cout,), jnp.float32)
    be1 = jnp.zeros((Cout,), jnp.float32)
    w2 = jax.random.normal(k2, (3, 3, Cout, Cout), jnp.float32) * 0.2
    b2 = jax.random.normal(kb2, (Cout,), jnp.float32) * 0.1
    g2 = jnp.ones((Cout,), jnp.float32)
    be2 = 0.05 * jnp.ones((Cout,), jnp.float32)
    params = (w1, b1, g1, be1, w2, b2, g2, be2)

    out = jax.block_until_ready(down_forward(x, params))
    ref = jax.block_until_ready(ref_forward(x, params))

    assert out.shape == (N, Cout, H // 2, W // 2)
    np.testing.assert_allclose(np.asarray(out), np.asarray(ref),
                               atol=1e-3, rtol=1e-3)
    print("KERNEL_OK")
</pallas_src>

<mosaic_0001>
module attributes {stable_mosaic.version = 11 : i64} {
  func.func @down_kernel(%arg0: memref<4x8x128xf32, #tpu.memory_space<vmem>>, %arg1: memref<8x72xf32, #tpu.memory_space<vmem>>, %arg2: memref<8x72xf32, #tpu.memory_space<vmem>>, %arg3: memref<8x4xf32, #tpu.memory_space<vmem>>, %arg4: memref<8x128xf32, #tpu.memory_space<vmem>>, %arg5: memref<24x128xf32, #tpu.memory_space<vmem>>) attributes {dimension_semantics = [], scalar_prefetch = 0 : i64, scratch_operands = 1 : i64, tpu.core_type = #tpu.core_type<tc>} {
    %c0 = arith.constant 0 : index
    %c0_0 = arith.constant 0 : index
    %c0_1 = arith.constant 0 : index
    %0 = vector.load %arg0[%c0, %c0_0, %c0_1] : memref<4x8x128xf32, #tpu.memory_space<vmem>>, vector<1x8x128xf32>
    %1 = vector.shape_cast %0 : vector<1x8x128xf32> to vector<8x128xf32>
    %c1 = arith.constant 1 : index
    %c0_2 = arith.constant 0 : index
    %c0_3 = arith.constant 0 : index
    %2 = vector.load %arg0[%c1, %c0_2, %c0_3] : memref<4x8x128xf32, #tpu.memory_space<vmem>>, vector<1x8x128xf32>
    %3 = vector.shape_cast %2 : vector<1x8x128xf32> to vector<8x128xf32>
    %4 = arith.maximumf %1, %3 : vector<8x128xf32>
    %c2 = arith.constant 2 : index
    %c0_4 = arith.constant 0 : index
    %c0_5 = arith.constant 0 : index
    %5 = vector.load %arg0[%c2, %c0_4, %c0_5] : memref<4x8x128xf32, #tpu.memory_space<vmem>>, vector<1x8x128xf32>
    %6 = vector.shape_cast %5 : vector<1x8x128xf32> to vector<8x128xf32>
    %c3 = arith.constant 3 : index
    %c0_6 = arith.constant 0 : index
    %c0_7 = arith.constant 0 : index
    %7 = vector.load %arg0[%c3, %c0_6, %c0_7] : memref<4x8x128xf32, #tpu.memory_space<vmem>>, vector<1x8x128xf32>
    %8 = vector.shape_cast %7 : vector<1x8x128xf32> to vector<8x128xf32>
    %9 = arith.maximumf %6, %8 : vector<8x128xf32>
    %10 = arith.maximumf %4, %9 : vector<8x128xf32>
    %11 = tpu.iota {dimensions = array<i32: 1>} : vector<1x128xi32>
    %c63_i32 = arith.constant 63 : i32
    %12 = vector.broadcast %c63_i32 : i32 to vector<1x128xi32>
    %13 = arith.andi %11, %12 : vector<1x128xi32>
    %c7_i32 = arith.constant 7 : i32
    %14 = vector.broadcast %c7_i32 : i32 to vector<1x128xi32>
    %15 = arith.andi %13, %14 : vector<1x128xi32>
    %c8_i32 = arith.constant 8 : i32
    %16 = vector.broadcast %c8_i32 : i32 to vector<1x128xi32>
    %17 = arith.cmpi sge, %13, %16 : vector<1x128xi32>
    %18 = arith.extui %17 : vector<1x128xi1> to vector<1x128xi32>
    %19 = arith.sitofp %18 : vector<1x128xi32> to vector<1x128xf32>
    %c56_i32 = arith.constant 56 : i32
    %20 = vector.broadcast %c56_i32 : i32 to vector<1x128xi32>
    %21 = arith.cmpi slt, %13, %20 : vector<1x128xi32>
    %22 = arith.extui %21 : vector<1x128xi1> to vector<1x128xi32>
    %23 = arith.sitofp %22 : vector<1x128xi32> to vector<1x128xf32>
    %c1_i32 = arith.constant 1 : i32
    %24 = vector.broadcast %c1_i32 : i32 to vector<1x128xi32>
    %25 = arith.cmpi sge, %15, %24 : vector<1x128xi32>
    %26 = arith.extui %25 : vector<1x128xi1> to vector<1x128xi32>
    %27 = arith.sitofp %26 : vector<1x128xi32> to vector<1x128xf32>
    %c7_i32_8 = arith.constant 7 : i32
    %28 = vector.broadcast %c7_i32_8 : i32 to vector<1x128xi32>
    %29 = arith.cmpi slt, %15, %28 : vector<1x128xi32>
    %30 = arith.extui %29 : vector<1x128xi1> to vector<1x128xi32>
    %31 = arith.sitofp %30 : vector<1x128xi32> to vector<1x128xf32>
    %32 = arith.mulf %19, %27 : vector<1x128xf32>
    %33 = arith.mulf %19, %31 : vector<1x128xf32>
    %34 = arith.mulf %23, %27 : vector<1x128xf32>
    %35 = arith.mulf %23, %31 : vector<1x128xf32>
    %c0_9 = arith.constant 0 : index
    %c0_10 = arith.constant 0 : index
    %36 = vector.load %arg3[%c0_9, %c0_10] : memref<8x4xf32, #tpu.memory_space<vmem>>, vector<8x4xf32>
    %37 = vector.extract_strided_slice %36 {offsets = [0, 0], sizes = [8, 1], strides = [1, 1]} : vector<8x4xf32> to vector<8x1xf32>
    %38 = vector.extract_strided_slice %36 {offsets = [0, 1], sizes = [8, 1], strides = [1, 1]} : vector<8x4xf32> to vector<8x1xf32>
    %c9_i32 = arith.constant 9 : i32
    %39 = tpu.dynamic_rotate %10 by %c9_i32 dim 1 : vector<8x128xf32>, i32 -> vector<8x128xf32>
    %40 = vector.broadcast %32 : vector<1x128xf32> to vector<8x128xf32>
    %41 = arith.mulf %39, %40 : vector<8x128xf32>
    %c0_11 = arith.constant 0 : index
    %c0_12 = arith.constant 0 : index
    %42 = vector.load %arg5[%c0_11, %c0_12] : memref<24x128xf32, #tpu.memory_space<vmem>>, vector<8x128xf32>
    tpu.vector_store %arg5[%c0_11, %c0_12], %41 {strides = array<i32>} : memref<24x128xf32, #tpu.memory_space<vmem>>, vector<8x128xf32>,
    %c8_i32_13 = arith.constant 8 : i32
    %43 = tpu.dynamic_rotate %10 by %c8_i32_13 dim 1 : vector<8x128xf32>, i32 -> vector<8x128xf32>
    %44 = vector.broadcast %19 : vector<1x128xf32> to vector<8x128xf32>
    %45 = arith.mulf %43, %44 : vector<8x128xf32>
    %c8 = arith.constant 8 : index
    %c0_14 = arith.constant 0 : index
    %46 = vector.load %arg5[%c8, %c0_14] : memref<24x128xf32, #tpu.memory_space<vmem>>, vector<8x128xf32>
    tpu.vector_store %arg5[%c8, %c0_14], %45 {strides = array<i32>} : memref<24x128xf32, #tpu.memory_space<vmem>>, vector<8x128xf32>,
    %c7_i32_15 = arith.constant 7 : i32
    %47 = tpu.dynamic_rotate %10 by %c7_i32_15 dim 1 : vector<8x128xf32>, i32 -> vector<8x128xf32>
    %48 = vector.broadcast %33 : vector<1x128xf32> to vector<8x128xf32>
    %49 = arith.mulf %47, %48 : vector<8x128xf32>
    %c16 = arith.constant 16 : index
    %c0_16 = arith.constant 0 : index
    %50 = vector.load %arg5[%c16, %c0_16] : memref<24x128xf32, #tpu.memory_space<vmem>>, vector<8x128xf32>
    tpu.vector_store %arg5[%c16, %c0_16], %49 {strides = array<i32>} : memref<24x128xf32, #tpu.memory_space<vmem>>, vector<8x128xf32>,
    %c0_17 = arith.constant 0 : index
    %c0_18 = arith.constant 0 : index
    %51 = vector.load %arg1[%c0_17, %c0_18] : memref<8x72xf32, #tpu.memory_space<vmem>>, vector<8x24xf32>
    %c0_19 = arith.constant 0 : index
    %c0_20 = arith.constant 0 : index
    %52 = vector.load %arg5[%c0_19, %c0_20] : memref<24x128xf32, #tpu.memory_space<vmem>>, vector<24x128xf32>
    %cst = arith.constant dense<0.000000e+00> : vector<8x128xf32>
    %53 = tpu.matmul %51, %52, %cst {dimension_numbers = #tpu.dot_dimension_numbers<[1], [0], [0], [1], [0, 0, 1, 1], [], []>, precision = #tpu.contract_precision<fp32>} : vector<8x24xf32>, vector<24x128xf32>, vector<8x128xf32> -> vector<8x128xf32>
    %c1_i32_21 = arith.constant 1 : i32
    %54 = tpu.dynamic_rotate %10 by %c1_i32_21 dim 1 : vector<8x128xf32>, i32 -> vector<8x128xf32>
    %55 = vector.broadcast %27 : vector<1x128xf32> to vector<8x128xf32>
    %56 = arith.mulf %54, %55 : vector<8x128xf32>
    %c0_22 = arith.constant 0 : index
    %c0_23 = arith.constant 0 : index
    %57 = vector.load %arg5[%c0_22, %c0_23] : memref<24x128xf32, #tpu.memory_space<vmem>>, vector<8x128xf32>
    tpu.vector_store %arg5[%c0_22, %c0_23], %56 {strides = array<i32>} : memref<24x128xf32, #tpu.memory_space<vmem>>, vector<8x128xf32>,
    %c8_24 = arith.constant 8 : index
    %c0_25 = arith.constant 0 : index
    %58 = vector.load %arg5[%c8_24, %c0_25] : memref<24x128xf32, #tpu.memory_space<vmem>>, vector<8x128xf32>
    tpu.vector_store %arg5[%c8_24, %c0_25], %10 {strides = array<i32>} : memref<24x128xf32, #tpu.memory_space<vmem>>, vector<8x128xf32>,
    %c127_i32 = arith.constant 127 : i32
    %59 = tpu.dynamic_rotate %10 by %c127_i32 dim 1 : vector<8x128xf32>, i32 -> vector<8x128xf32>
    %60 = vector.broadcast %31 : vector<1x128xf32> to vector<8x128xf32>
    %61 = arith.mulf %59, %60 : vector<8x128xf32>
    %c16_26 = arith.constant 16 : index
    %c0_27 = arith.constant 0 : index
    %62 = vector.load %arg5[%c16_26, %c0_27] : memref<24x128xf32, #tpu.memory_space<vmem>>, vector<8x128xf32>
    tpu.vector_store %arg5[%c16_26, %c0_27], %61 {strides = array<i32>} : memref<24x128xf32, #tpu.memory_space<vmem>>, vector<8x128xf32>,
    %c0_28 = arith.constant 0 : index
    %c24 = arith.constant 24 : index
    %63 = vector.load %arg1[%c0_28, %c24] : memref<8x72xf32, #tpu.memory_space<vmem>>, vector<8x24xf32>
    %c0_29 = arith.constant 0 : index
    %c0_30 = arith.constant 0 : index
    %64 = vector.load %arg5[%c0_29, %c0_30] : memref<24x128xf32, #tpu.memory_space<vmem>>, vector<24x128xf32>
    %cst_31 = arith.constant dense<0.000000e+00> : vector<8x128xf32>
    %65 = tpu.matmul %63, %64, %cst_31 {dimension_numbers = #tpu.dot_dimension_numbers<[1], [0], [0], [1], [0, 0, 1, 1], [], []>, precision = #tpu.contract_precision<fp32>} : vector<8x24xf32>, vector<24x128xf32>, vector<8x128xf32> -> vector<8x128xf32>
    %66 = arith.addf %53, %65 : vector<8x128xf32>
    %c121_i32 = arith.constant 121 : i32
    %67 = tpu.dynamic_rotate %10 by %c121_i32 dim 1 : vector<8x128xf32>, i32 -> vector<8x128xf32>
    %68 = vector.broadcast %34 : vector<1x128xf32> to vector<8x128xf32>
    %69 = arith.mulf %67, %68 : vector<8x128xf32>
    %c0_32 = arith.constant 0 : index
    %c0_33 = arith.constant 0 : index
    %70 = vector.load %arg5[%c0_32, %c0_33] : memref<24x128xf32, #tpu.memory_space<vmem>>, vector<8x128xf32>
    tpu.vector_store %arg5[%c0_32, %c0_33], %69 {strides = array<i32>} : memref<24x128xf32, #tpu.memory_space<vmem>>, vector<8x128xf32>,
    %c120_i32 = arith.constant 120 : i32
    %71 = tpu.dynamic_rotate %10 by %c120_i32 dim 1 : vector<8x128xf32>, i32 -> vector<8x128xf32>
    %72 = vector.broadcast %23 : vector<1x128xf32> to vector<8x128xf32>
    %73 = arith.mulf %71, %72 : vector<8x128xf32>
    %c8_34 = arith.constant 8 : index
    %c0_35 = arith.constant 0 : index
    %74 = vector.load %arg5[%c8_34, %c0_35] : memref<24x128xf32, #tpu.memory_space<vmem>>, vector<8x128xf32>
    tpu.vector_store %arg5[%c8_34, %c0_35], %73 {strides = array<i32>} : memref<24x128xf32, #tpu.memory_space<vmem>>, vector<8x128xf32>,
    %c119_i32 = arith.constant 119 : i32
    %75 = tpu.dynamic_rotate %10 by %c119_i32 dim 1 : vector<8x128xf32>, i32 -> vector<8x128xf32>
    %76 = vector.broadcast %35 : vector<1x128xf32> to vector<8x128xf32>
    %77 = arith.mulf %75, %76 : vector<8x128xf32>
    %c16_36 = arith.constant 16 : index
    %c0_37 = arith.constant 0 : index
    %78 = vector.load %arg5[%c16_36, %c0_37] : memref<24x128xf32, #tpu.memory_space<vmem>>, vector<8x128xf32>
    tpu.vector_store %arg5[%c16_36, %c0_37], %77 {strides = array<i32>} : memref<24x128xf32, #tpu.memory_space<vmem>>, vector<8x128xf32>,
    %c0_38 = arith.constant 0 : index
    %c48 = arith.constant 48 : index
    %79 = vector.load %arg1[%c0_38, %c48] : memref<8x72xf32, #tpu.memory_space<vmem>>, vector<8x24xf32>
    %c0_39 = arith.constant 0 : index
    %c0_40 = arith.constant 0 : index
    %80 = vector.load %arg5[%c0_39, %c0_40] : memref<24x128xf32, #tpu.memory_space<vmem>>, vector<24x128xf32>
    %cst_41 = arith.constant dense<0.000000e+00> : vector<8x128xf32>
    %81 = tpu.matmul %79, %80, %cst_41 {dimension_numbers = #tpu.dot_dimension_numbers<[1], [0], [0], [1], [0, 0, 1, 1], [], []>, precision = #tpu.contract_precision<fp32>} : vector<8x24xf32>, vector<24x128xf32>, vector<8x128xf32> -> vector<8x128xf32>
    %82 = arith.addf %66, %81 : vector<8x128xf32>
    %cst_42 = arith.constant dense<0.000000e+00> : vector<8xf32>
    %83 = vector.multi_reduction <add>, %82, %cst_42 [1] : vector<8x128xf32> to vector<8xf32>
    %84 = vector.shape_cast %83 : vector<8xf32> to vector<8x1xf32>
    %cst_43 = arith.constant 7.812500e-03 : f32
    %85 = vector.broadcast %cst_43 : f32 to vector<8x1xf32>
    %86 = arith.mulf %84, %85 : vector<8x1xf32>
    %87 = arith.mulf %82, %82 : vector<8x128xf32>
    %cst_44 = arith.constant dense<0.000000e+00> : vector<8xf32>
    %88 = vector.multi_reduction <add>, %87, %cst_44 [1] : vector<8x128xf32> to vector<8xf32>
    %89 = vector.shape_cast %88 : vector<8xf32> to vector<8x1xf32>
    %cst_45 = arith.constant 7.812500e-03 : f32
    %90 = vector.broadcast %cst_45 : f32 to vector<8x1xf32>
    %91 = arith.mulf %89, %90 : vector<8x1xf32>
    %92 = arith.mulf %86, %86 : vector<8x1xf32>
    %93 = arith.subf %91, %92 : vector<8x1xf32>
    %cst_46 = arith.constant 0.000000e+00 : f32
    %94 = vector.broadcast %cst_46 : f32 to vector<8x1xf32>
    %95 = arith.maximumf %93, %94 : vector<8x1xf32>
    %cst_47 = arith.constant 9.99999974E-6 : f32
    %96 = vector.broadcast %cst_47 : f32 to vector<8x1xf32>
    %97 = arith.addf %95, %96 : vector<8x1xf32>
    %98 = math.rsqrt %97 : vector<8x1xf32>
    %99 = arith.mulf %37, %98 : vector<8x1xf32>
    %100 = arith.mulf %86, %99 : vector<8x1xf32>
    %101 = arith.subf %38, %100 : vector<8x1xf32>
    %102 = vector.broadcast %99 : vector<8x1xf32> to vector<8x128xf32>
    %103 = arith.mulf %82, %102 : vector<8x128xf32>
    %104 = vector.broadcast %101 : vector<8x1xf32> to vector<8x128xf32>
    %105 = arith.addf %103, %104 : vector<8x128xf32>
    %cst_48 = arith.constant 0.000000e+00 : f32
    %106 = vector.broadcast %cst_48 : f32 to vector<8x128xf32>
    %107 = arith.maximumf %105, %106 : vector<8x128xf32>
    %108 = vector.extract_strided_slice %36 {offsets = [0, 2], sizes = [8, 1], strides = [1, 1]} : vector<8x4xf32> to vector<8x1xf32>
    %109 = vector.extract_strided_slice %36 {offsets = [0, 3], sizes = [8, 1], strides = [1, 1]} : vector<8x4xf32> to vector<8x1xf32>
    %c9_i32_49 = arith.constant 9 : i32
    %110 = tpu.dynamic_rotate %107 by %c9_i32_49 dim 1 : vector<8x128xf32>, i32 -> vector<8x128xf32>
    %111 = vector.broadcast %32 : vector<1x128xf32> to vector<8x128xf32>
    %112 = arith.mulf %110, %111 : vector<8x128xf32>
    %c0_50 = arith.constant 0 : index
    %c0_51 = arith.constant 0 : index
    %113 = vector.load %arg5[%c0_50, %c0_51] : memref<24x128xf32, #tpu.memory_space<vmem>>, vector<8x128xf32>
    tpu.vector_store %arg5[%c0_50, %c0_51], %112 {strides = array<i32>} : memref<24x128xf32, #tpu.memory_space<vmem>>, vector<8x128xf32>,
    %c8_i32_52 = arith.constant 8 : i32
    %114 = tpu.dynamic_rotate %107 by %c8_i32_52 dim 1 : vector<8x128xf32>, i32 -> vector<8x128xf32>
    %115 = vector.broadcast %19 : vector<1x128xf32> to vector<8x128xf32>
    %116 = arith.mulf %114, %115 : vector<8x128xf32>
    %c8_53 = arith.constant 8 : index
    %c0_54 = arith.constant 0 : index
    %117 = vector.load %arg5[%c8_53, %c0_54] : memref<24x128xf32, #tpu.memory_space<vmem>>, vector<8x128xf32>
    tpu.vector_store %arg5[%c8_53, %c0_54], %116 {strides = array<i32>} : memref<24x128xf32, #tpu.memory_space<vmem>>, vector<8x128xf32>,
    %c7_i32_55 = arith.constant 7 : i32
    %118 = tpu.dynamic_rotate %107 by %c7_i32_55 dim 1 : vector<8x128xf32>, i32 -> vector<8x128xf32>
    %119 = vector.broadcast %33 : vector<1x128xf32> to vector<8x128xf32>
    %120 = arith.mulf %118, %119 : vector<8x128xf32>
    %c16_56 = arith.constant 16 : index
    %c0_57 = arith.constant 0 : index
    %121 = vector.load %arg5[%c16_56, %c0_57] : memref<24x128xf32, #tpu.memory_space<vmem>>, vector<8x128xf32>
    tpu.vector_store %arg5[%c16_56, %c0_57], %120 {strides = array<i32>} : memref<24x128xf32, #tpu.memory_space<vmem>>, vector<8x128xf32>,
    %c0_58 = arith.constant 0 : index
    %c0_59 = arith.constant 0 : index
    %122 = vector.load %arg2[%c0_58, %c0_59] : memref<8x72xf32, #tpu.memory_space<vmem>>, vector<8x24xf32>
    %c0_60 = arith.constant 0 : index
    %c0_61 = arith.constant 0 : index
    %123 = vector.load %arg5[%c0_60, %c0_61] : memref<24x128xf32, #tpu.memory_space<vmem>>, vector<24x128xf32>
    %cst_62 = arith.constant dense<0.000000e+00> : vector<8x128xf32>
    %124 = tpu.matmul %122, %123, %cst_62 {dimension_numbers = #tpu.dot_dimension_numbers<[1], [0], [0], [1], [0, 0, 1, 1], [], []>, precision = #tpu.contract_precision<fp32>} : vector<8x24xf32>, vector<24x128xf32>, vector<8x128xf32> -> vector<8x128xf32>
    %c1_i32_63 = arith.constant 1 : i32
    %125 = tpu.dynamic_rotate %107 by %c1_i32_63 dim 1 : vector<8x128xf32>, i32 -> vector<8x128xf32>
    %126 = vector.broadcast %27 : vector<1x128xf32> to vector<8x128xf32>
    %127 = arith.mulf %125, %126 : vector<8x128xf32>
    %c0_64 = arith.constant 0 : index
    %c0_65 = arith.constant 0 : index
    %128 = vector.load %arg5[%c0_64, %c0_65] : memref<24x128xf32, #tpu.memory_space<vmem>>, vector<8x128xf32>
    tpu.vector_store %arg5[%c0_64, %c0_65], %127 {strides = array<i32>} : memref<24x128xf32, #tpu.memory_space<vmem>>, vector<8x128xf32>,
    %c8_66 = arith.constant 8 : index
    %c0_67 = arith.constant 0 : index
    %129 = vector.load %arg5[%c8_66, %c0_67] : memref<24x128xf32, #tpu.memory_space<vmem>>, vector<8x128xf32>
    tpu.vector_store %arg5[%c8_66, %c0_67], %107 {strides = array<i32>} : memref<24x128xf32, #tpu.memory_space<vmem>>, vector<8x128xf32>,
    %c127_i32_68 = arith.constant 127 : i32
    %130 = tpu.dynamic_rotate %107 by %c127_i32_68 dim 1 : vector<8x128xf32>, i32 -> vector<8x128xf32>
    %131 = vector.broadcast %31 : vector<1x128xf32> to vector<8x128xf32>
    %132 = arith.mulf %130, %131 : vector<8x128xf32>
    %c16_69 = arith.constant 16 : index
    %c0_70 = arith.constant 0 : index
    %133 = vector.load %arg5[%c16_69, %c0_70] : memref<24x128xf32, #tpu.memory_space<vmem>>, vector<8x128xf32>
    tpu.vector_store %arg5[%c16_69, %c0_70], %132 {strides = array<i32>} : memref<24x128xf32, #tpu.memory_space<vmem>>, vector<8x128xf32>,
    %c0_71 = arith.constant 0 : index
    %c24_72 = arith.constant 24 : index
    %134 = vector.load %arg2[%c0_71, %c24_72] : memref<8x72xf32, #tpu.memory_space<vmem>>, vector<8x24xf32>
    %c0_73 = arith.constant 0 : index
    %c0_74 = arith.constant 0 : index
    %135 = vector.load %arg5[%c0_73, %c0_74] : memref<24x128xf32, #tpu.memory_space<vmem>>, vector<24x128xf32>
    %cst_75 = arith.constant dense<0.000000e+00> : vector<8x128xf32>
    %136 = tpu.matmul %134, %135, %cst_75 {dimension_numbers = #tpu.dot_dimension_numbers<[1], [0], [0], [1], [0, 0, 1, 1], [], []>, precision = #tpu.contract_precision<fp32>} : vector<8x24xf32>, vector<24x128xf32>, vector<8x128xf32> -> vector<8x128xf32>
    %137 = arith.addf %124, %136 : vector<8x128xf32>
    %c121_i32_76 = arith.constant 121 : i32
    %138 = tpu.dynamic_rotate %107 by %c121_i32_76 dim 1 : vector<8x128xf32>, i32 -> vector<8x128xf32>
    %139 = vector.broadcast %34 : vector<1x128xf32> to vector<8x128xf32>
    %140 = arith.mulf %138, %139 : vector<8x128xf32>
    %c0_77 = arith.constant 0 : index
    %c0_78 = arith.constant 0 : index
    %141 = vector.load %arg5[%c0_77, %c0_78] : memref<24x128xf32, #tpu.memory_space<vmem>>, vector<8x128xf32>
    tpu.vector_store %arg5[%c0_77, %c0_78], %140 {strides = array<i32>} : memref<24x128xf32, #tpu.memory_space<vmem>>, vector<8x128xf32>,
    %c120_i32_79 = arith.constant 120 : i32
    %142 = tpu.dynamic_rotate %107 by %c120_i32_79 dim 1 : vector<8x128xf32>, i32 -> vector<8x128xf32>
    %143 = vector.broadcast %23 : vector<1x128xf32> to vector<8x128xf32>
    %144 = arith.mulf %142, %143 : vector<8x128xf32>
    %c8_80 = arith.constant 8 : index
    %c0_81 = arith.constant 0 : index
    %145 = vector.load %arg5[%c8_80, %c0_81] : memref<24x128xf32, #tpu.memory_space<vmem>>, vector<8x128xf32>
    tpu.vector_store %arg5[%c8_80, %c0_81], %144 {strides = array<i32>} : memref<24x128xf32, #tpu.memory_space<vmem>>, vector<8x128xf32>,
    %c119_i32_82 = arith.constant 119 : i32
    %146 = tpu.dynamic_rotate %107 by %c119_i32_82 dim 1 : vector<8x128xf32>, i32 -> vector<8x128xf32>
    %147 = vector.broadcast %35 : vector<1x128xf32> to vector<8x128xf32>
    %148 = arith.mulf %146, %147 : vector<8x128xf32>
    %c16_83 = arith.constant 16 : index
    %c0_84 = arith.constant 0 : index
    %149 = vector.load %arg5[%c16_83, %c0_84] : memref<24x128xf32, #tpu.memory_space<vmem>>, vector<8x128xf32>
    tpu.vector_store %arg5[%c16_83, %c0_84], %148 {strides = array<i32>} : memref<24x128xf32, #tpu.memory_space<vmem>>, vector<8x128xf32>,
    %c0_85 = arith.constant 0 : index
    %c48_86 = arith.constant 48 : index
    %150 = vector.load %arg2[%c0_85, %c48_86] : memref<8x72xf32, #tpu.memory_space<vmem>>, vector<8x24xf32>
    %c0_87 = arith.constant 0 : index
    %c0_88 = arith.constant 0 : index
    %151 = vector.load %arg5[%c0_87, %c0_88] : memref<24x128xf32, #tpu.memory_space<vmem>>, vector<24x128xf32>
    %cst_89 = arith.constant dense<0.000000e+00> : vector<8x128xf32>
    %152 = tpu.matmul %150, %151, %cst_89 {dimension_numbers = #tpu.dot_dimension_numbers<[1], [0], [0], [1], [0, 0, 1, 1], [], []>, precision = #tpu.contract_precision<fp32>} : vector<8x24xf32>, vector<24x128xf32>, vector<8x128xf32> -> vector<8x128xf32>
    %153 = arith.addf %137, %152 : vector<8x128xf32>
    %cst_90 = arith.constant dense<0.000000e+00> : vector<8xf32>
    %154 = vector.multi_reduction <add>, %153, %cst_90 [1] : vector<8x128xf32> to vector<8xf32>
    %155 = vector.shape_cast %154 : vector<8xf32> to vector<8x1xf32>
    %cst_91 = arith.constant 7.812500e-03 : f32
    %156 = vector.broadcast %cst_91 : f32 to vector<8x1xf32>
    %157 = arith.mulf %155, %156 : vector<8x1xf32>
    %158 = arith.mulf %153, %153 : vector<8x128xf32>
    %cst_92 = arith.constant dense<0.000000e+00> : vector<8xf32>
    %159 = vector.multi_reduction <add>, %158, %cst_92 [1] : vector<8x128xf32> to vector<8xf32>
    %160 = vector.shape_cast %159 : vector<8xf32> to vector<8x1xf32>
    %cst_93 = arith.constant 7.812500e-03 : f32
    %161 = vector.broadcast %cst_93 : f32 to vector<8x1xf32>
    %162 = arith.mulf %160, %161 : vector<8x1xf32>
    %163 = arith.mulf %157, %157 : vector<8x1xf32>
    %164 = arith.subf %162, %163 : vector<8x1xf32>
    %cst_94 = arith.constant 0.000000e+00 : f32
    %165 = vector.broadcast %cst_94 : f32 to vector<8x1xf32>
    %166 = arith.maximumf %164, %165 : vector<8x1xf32>
    %cst_95 = arith.constant 9.99999974E-6 : f32
    %167 = vector.broadcast %cst_95 : f32 to vector<8x1xf32>
    %168 = arith.addf %166, %167 : vector<8x1xf32>
    %169 = math.rsqrt %168 : vector<8x1xf32>
    %170 = arith.mulf %108, %169 : vector<8x1xf32>
    %171 = arith.mulf %157, %170 : vector<8x1xf32>
    %172 = arith.subf %109, %171 : vector<8x1xf32>
    %173 = vector.broadcast %170 : vector<8x1xf32> to vector<8x128xf32>
    %174 = arith.mulf %153, %173 : vector<8x128xf32>
    %175 = vector.broadcast %172 : vector<8x1xf32> to vector<8x128xf32>
    %176 = arith.addf %174, %175 : vector<8x128xf32>
    %cst_96 = arith.constant 0.000000e+00 : f32
    %177 = vector.broadcast %cst_96 : f32 to vector<8x128xf32>
    %178 = arith.maximumf %176, %177 : vector<8x128xf32>
    %c0_97 = arith.constant 0 : index
    %c0_98 = arith.constant 0 : index
    %179 = vector.load %arg4[%c0_97, %c0_98] : memref<8x128xf32, #tpu.memory_space<vmem>>, vector<8x128xf32>
    tpu.vector_store %arg4[%c0_97, %c0_98], %178 {strides = array<i32>} : memref<8x128xf32, #tpu.memory_space<vmem>>, vector<8x128xf32>,
    return
  }
}

</mosaic_0001>

<bundles_post_ra>
// kernel: tpu_custom_call.1
= control target key start
LH: loop header
LB: loop body
LE: loop exit
PB: predicated region body
PF: predicated region fallthrough
CT: control target
= control target key end

     0   :  { %9 = vsyncpa [#allocation4], 0  ;;  %s4230_s0 = inlined_call_operand.hbm [shape: f32[4,8,128], index: 0, kind: input, shape index: {}]   ;;  %s4231_s1 = inlined_call_operand.vmem [shape: f32[8,72], index: 1, kind: input, shape index: {}]   ;;  %s4232_s2 = inlined_call_operand.hbm [shape: f32[8,72], index: 2, kind: input, shape index: {}]   ;;  %s4233_s3 = inlined_call_operand.vmem [shape: f32[8,4], index: 3, kind: input, shape index: {}]   ;;  %s4234_s4 = inlined_call_operand.hbm [shape: f32[8,128], index: 4, kind: output, shape index: {}]  }
   0x1   :  { %10 = vsyncpa [#allocation7], 0 }
   0x2   :  { %11 = vsyncpa [#allocation5], 0  ;;  %s3673_s15 = smov [#allocation3]  }
   0x3   :  { %s17_s16 = sshll.u32 %s3673_s15, 4  ;;  %s18_s16 = int_to_ptr.vmem [resolvable:$true] %s17_s16 }
   0x4   :  { %s3615_s17 = scalar_lea.vmem %s18_s16, 512  ;;  %p3620_p1 = scmp.lt.s32.totalorder %s18_s16, %s18_s16 }
   0x5   :  { %p3616_p0 = scmp.ne.s32.totalorder %s18_s16, %s3615_s17  ;;  %p3621_p2 = scmp.lt.s32.totalorder %s3615_s17, %s3615_s17 }
   0x7   :  { %p3622_p3 = por %p3621_p2, %p3620_p1 }
   0x9   :  { %p3623_p4 = pnand %p3622_p3, %p3616_p0 }
   0xb   :  { %3626 = shalt.err (!%p3623_p4)
}
   0xc   :  { %s3674_s18 = smov 128   ;;  %s3675_s19 = smov 8  }
   0xd   :  { %23 = dma.hbm_to_vmem [thread:$0]  %s4230_s0, 512, %s18_s16, [#allocation4], %s3674_s18, %s3674_s18, %s3675_s19  }
   0xe   :  { %s3676_s22 = smov [#allocation6]  }
   0xf   :  { %s32_s23 = sshll.u32 %s3676_s22, 4  ;;  %s33_s23 = int_to_ptr.vmem [resolvable:$true] %s32_s23 }
  0x10   :  { %s3635_s24 = scalar_lea.vmem %s33_s23, 128  ;;  %p3640_p6 = scmp.lt.s32.totalorder %s33_s23, %s33_s23 }
  0x11   :  { %p3636_p5 = scmp.ne.s32.totalorder %s33_s23, %s3635_s24  ;;  %p3641_p7 = scmp.lt.s32.totalorder %s3635_s24, %s3635_s24 }
  0x13   :  { %p3642_p8 = por %p3641_p7, %p3640_p6 }
  0x15   :  { %p3643_p9 = pnand %p3642_p8, %p3636_p5 }
  0x17   :  { %3646 = shalt.err (!%p3643_p9)
}
  0x18   :  { %35 = dma.hbm_to_vmem [thread:$0]  %s4232_s2, 128, %s33_s23, [#allocation7]  }
  0x19   :  { %3667 = dma.done.wait [#allocation4], 512  }
  0x1a   :  { %3668 = vsyncadd [#allocation4], 4294966784 }
  0x1b   :  { %3669 = dma.done.wait [#allocation7], 128  }
  0x1c   :  { %3670 = vsyncadd [#allocation7], 4294967168  ;;  %v3677_v0 = vmov 0.0   ;;  %v3730_v1 = vld [vmem:[%s4231_s1] sm:$0xff]  ;;  %v46_v3 = vld [vmem:[#allocation3 + $0x8] sm:$0xff]  ;;  %s3678_s28 = smov 104   ;;  %v54_v9 = vlaneseq }
  0x1d   :  { %3255 = vmatprep.subr.mxu0 %v3677_v0  ;;  %3264 = vmatprep.subr.mxu1 %v3677_v0  ;;  %v44_v2 = vld [vmem:[#allocation3] sm:$0xff]  ;;  %v49_v5 = vld [vmem:[#allocation3 + $0x10] sm:$0xff]  ;;  %v51_v6 = vld [vmem:[#allocation3 + $0x18] sm:$0xff]  ;;  %vm3679_vm0 = vmmov 0   ;;  %s3680_s1 = smov 127   ;;  %s3681_s2 = smov 7  }
  0x1e   :  { %105 = vrot.lane.b32.xlu1 %v3730_v1, %s3678_s28  ;;  %v47_v4 = vmax.f32 %v44_v2, %v46_v3  ;;  %v52_v7 = vmax.f32 %v49_v5, %v51_v6  ;;  %3261 = vmatprep.mubr.msk.f32.mxu0 %vm3679_vm0, %v3677_v0  ;;  %s3682_s29 = smov 1   ;;  %s3683_s30 = smov 9   ;;  %v55_v10 = vand.u32 127, %v54_v9  ;;  %vm107_vm1 = vcmask 195584  }
  0x1f   :  { %3270 = vmatprep.mubr.msk.f32.mxu1 %vm3679_vm0, %v3677_v0  ;;  %s3684_s5 = smov 120   ;;  %s3685_s6 = smov 119   ;;  %v583_v39 = vsel %vm107_vm1, %v3730_v1, 0 }
  0x20   :  { %v53_v8 = vmax.f32 %v47_v4, %v52_v7  ;;  %s3686_s7 = smov 80   ;;  %s3687_s8 = smov 121   ;;  %v3748_v11 = vand.u32 63, %v55_v10  ;;  %v3797_v45 = vand.u32 4294901760, %v583_v39 }
  0x22   :  { %96 = vrot.lane.b32.xlu0 %v53_v8, %s3680_s1  ;;  %83 = vrot.lane.b32.xlu1 %v53_v8, %s3681_s2  ;;  %v57_v12 = vand.u32 7, %v3748_v11  ;;  %v3751_v14 = vand.u32 4294901760, %v53_v8  ;;  %vm58_vm4 = vcmp.ge.s32.totalorder %v3748_v11, 8  ;;  %v3811_v51 = vsub.f32 %v583_v39, %v3797_v45 }
  0x23   :  { %v3782_v33 = vsel %vm58_vm4, 1.0, %v3677_v0  ;;  %vm61_vm5 = vcmp.lt.s32.totalorder %v3748_v11, 56 }
  0x24   :  { %vm67_vm2 = vcmp.lt.s32.totalorder %v57_v12, 7  ;;  %vm64_vm3 = vcmp.ge.s32.totalorder %v57_v12, 1  ;;  %v223_v19 = vsub.f32 %v53_v8, %v3751_v14  ;;  %v655_v55 = vand.u32 4294901760, %v3811_v51 }
  0x25   :  { %v3757_v17 = vsel %vm67_vm2, 1.0, %v3677_v0  ;;  %v3766_v23 = vsel %vm64_vm3, 1.0, %v3677_v0  ;;  %v3868_v4 = vsel %vm61_vm5, 1.0, %v3677_v0 }
  0x26   :  { %91 = vrot.lane.b32.xlu0 %v53_v8, %s3682_s29  ;;  %75 = vrot.lane.b32.xlu1 %v53_v8, %s3683_s30  ;;  %v224_v26 = vand.u32 4294901760, %v223_v19  ;;  %v3790_v38 = vmul.f32 %v3757_v17, %v3782_v33  ;;  %v3804_v47 = vmul.f32 %v3766_v23, %v3782_v33  ;;  %v656_v59 = vsub.f32 %v3811_v51, %v655_v55 }
  0x27   :  { %v3880_v9 = vmul.f32 %v3757_v17, %v3868_v4 }
  0x28   :  { %v225_v34 = vsub.f32 %v223_v19, %v224_v26 }
  0x2a   :  { %79 = vrot.lane.b32.xlu0 %v53_v8, %s3675_s19  ;;  %1061 = vrot.lane.b32.xlu1 %v53_v8, %s3684_s5  ;;  %v226_v41 = vand.u32 4294901760, %v225_v34 }
  0x2e   :  { %1065 = vrot.lane.b32.xlu0 %v53_v8, %s3685_s6  ;;  %1074 = vrot.lane.b32.xlu1 %v3730_v1, %s3686_s7  ;;  %v657_v1 = vand.u32 4294901760, %v656_v59 }
  0x32   :  { %1057 = vrot.lane.b32.xlu0 %v53_v8, %s3687_s8 }
  0x90   :  { %v106_v13 = vpop.permute.xlu1 %105 }
  0x91   :  { %v108_v15 = vsel %vm107_vm1, %v106_v13, 0 }
  0x92   :  { %v3754_v16 = vand.u32 4294901760, %v108_v15 }
  0x94   :  { %v3760_v18 = vsub.f32 %v108_v15, %v3754_v16  ;;  %v97_v20 = vpop.permute.xlu0 %96  ;;  %v84_v37 = vpop.permute.xlu1 %83 }
  0x95   :  { %v98_v22 = vmul.f32 %v3757_v17, %v97_v20  ;;  %v85_v46 = vmul.f32 %v84_v37, %v3790_v38 }
  0x96   :  { %v180_v21 = vand.u32 4294901760, %v3760_v18 }
  0x97   :  { %v3768_v24 = vand.u32 4294901760, %v98_v22  ;;  %v3813_v52 = vand.u32 4294901760, %v85_v46 }
  0x98   :  { %v181_v25 = vsub.f32 %v3760_v18, %v180_v21  ;;  %v92_v27 = vpop.permute.xlu0 %91  ;;  %v76_v49 = vpop.permute.xlu1 %75 }
  0x99   :  { %v216_v28 = vsub.f32 %v98_v22, %v3768_v24  ;;  %v93_v29 = vmul.f32 %v3766_v23, %v92_v27  ;;  %3256 = vmatpush3.msra.mxu0 %v3768_v24  ;;  %v77_v53 = vmul.f32 %v76_v49, %v3804_v47  ;;  %v3826_v56 = vsub.f32 %v85_v46, %v3813_v52 }
  0x9a   :  { %3257 = vmatprep.subr.mxu0 %v3677_v0  ;;  %v182_v30 = vand.u32 4294901760, %v181_v25 }
  0x9b   :  { %v3778_v31 = vand.u32 4294901760, %v93_v29  ;;  %3258 = vmatpush3.msra.mxu0 %v3751_v14  ;;  %v217_v32 = vand.u32 4294901760, %v216_v28  ;;  %v3828_v57 = vand.u32 4294901760, %v77_v53  ;;  %v692_v61 = vand.u32 4294901760, %v3826_v56 }
  0x9c   :  { %3259 = vmatprep.subr.mxu0 %v3677_v0  ;;  %v80_v43 = vpop.permute.xlu0 %79  ;;  %v1062_v60 = vpop.permute.xlu1 %1061 }
  0x9d   :  { %v230_v35 = vsub.f32 %v93_v29, %v3778_v31  ;;  %3260 = vmatpush3.msra.mxu0 %v3778_v31  ;;  %v218_v36 = vsub.f32 %v216_v28, %v217_v32  ;;  %v81_v50 = vmul.f32 %v3782_v33, %v80_v43  ;;  %v3847_v62 = vsub.f32 %v77_v53, %v3828_v57 }
  0x9e   :  { %3273 = vmatprep.subr.mxu0 %v3677_v0  ;;  %3262 = vmatmul.mubr.f32.vlgmr.msra.gmra.mxu0 %v182_v30  ;;  %v693_v2 = vsub.f32 %v3826_v56, %v692_v61 }
  0x9f   :  { %3274 = vmatpush3.msra.mxu0 %v216_v28  ;;  %v219_v40 = vand.u32 4294901760, %v218_v36  ;;  %3279 = vmatprep.mubr.msk.f32.mxu0 %vm3679_vm0, %v3677_v0  ;;  %v231_v42 = vand.u32 4294901760, %v230_v35  ;;  %v3819_v54 = vand.u32 4294901760, %v81_v50  ;;  %v706_v3 = vand.u32 4294901760, %v3847_v62 }
  0xa0   :  { %3275 = vmatprep.subr.mxu0 %v3677_v0  ;;  %v1075_v5 = vpop.permute.xlu1 %1074  ;;  %v694_v8 = vand.u32 4294901760, %v693_v2  ;;  %v1066_v10 = vpop.permute.xlu0 %1065 }
  0xa1   :  { %3265 = vmatpush3.msra.mxu1 %v219_v40  ;;  %3276 = vmatpush3.msra.mxu0 %v223_v19  ;;  %v232_v44 = vsub.f32 %v230_v35, %v231_v42  ;;  %v3835_v58 = vsub.f32 %v81_v50, %v3819_v54  ;;  %v707_v7 = vsub.f32 %v3847_v62, %v706_v3  ;;  %v1076_v11 = vsel %vm107_vm1, %v1075_v5, 0 }
  0xa2   :  { %3266 = vmatprep.subr.mxu1 %v3677_v0  ;;  %3277 = vmatprep.subr.mxu0 %v3677_v0  ;;  %v3888_v13 = vand.u32 4294901760, %v1076_v11 }
  0xa3   :  { %3267 = vmatpush3.msra.mxu1 %v226_v41  ;;  %3278 = vmatpush3.msra.mxu0 %v230_v35  ;;  %v233_v48 = vand.u32 4294901760, %v232_v44  ;;  %v699_v63 = vand.u32 4294901760, %v3835_v58  ;;  %v708_v15 = vand.u32 4294901760, %v707_v7 }
  0xa4   :  { %3268 = vmatprep.subr.mxu1 %v3677_v0  ;;  %3280 = vmatmul.mubr.f32.vlgmr.msra.gmra.mxu0 %v3760_v18  ;;  %v1063_v18 = vmul.f32 %v3868_v4, %v1062_v60  ;;  %v1058_v19 = vpop.permute.xlu0 %1057  ;;  %v3902_v20 = vsub.f32 %v1076_v11, %v3888_v13 }
  0xa5   :  { %3291 = vmatprep.subr.mxu0 %v3677_v0  ;;  %3269 = vmatpush3.msra.mxu1 %v233_v48  ;;  %v700_v6 = vsub.f32 %v3835_v58, %v699_v63 }
  0xa6   :  { %3292 = vmatpush3.msra.mxu0 %v217_v32  ;;  %3271 = vmatmul.mubr.f32.vlgmr.msra.gmra.mxu1 %v3754_v16  ;;  %v1148_v25 = vand.u32 4294901760, %v3902_v20 }
  0xa7   :  { %3282 = vmatprep.subr.mxu1 %v3677_v0  ;;  %3293 = vmatprep.subr.mxu0 %v3677_v0  ;;  %v701_v12 = vand.u32 4294901760, %v700_v6 }
  0xa8   :  { %3283 = vmatpush3.msra.mxu1 %v3768_v24  ;;  %3294 = vmatpush3.msra.mxu0 %v224_v26  ;;  %v1149_v29 = vsub.f32 %v3902_v20, %v1148_v25 }
  0xa9   :  { %3284 = vmatprep.subr.mxu1 %v3677_v0  ;;  %3295 = vmatprep.subr.mxu0 %v3677_v0 }
  0xaa   :  { %3285 = vmatpush3.msra.mxu1 %v3751_v14  ;;  %3296 = vmatpush3.msra.mxu0 %v231_v42  ;;  %v1150_v34 = vand.u32 4294901760, %v1149_v29 }
  0xab   :  { %3297 = vmatprep.mubr.msk.f32.mxu0 %vm3679_vm0, %v3677_v0  ;;  %3286 = vmatprep.subr.mxu1 %v3677_v0 }
  0xac   :  { %3298 = vmatmul.mubr.f32.vlgmr.msra.gmra.mxu0 %v3754_v16  ;;  %3309 = vmatprep.subr.mxu0 %v3677_v0 }
  0xad   :  { %3287 = vmatpush3.msra.mxu1 %v3778_v31  ;;  %3288 = vmatprep.mubr.msk.f32.mxu1 %vm3679_vm0, %v3677_v0 }
  0xae   :  { %3310 = vmatpush3.msra.mxu0 %v3813_v52  ;;  %3289 = vmatmul.mubr.f32.vlgmr.msra.gmra.mxu1 %v180_v21 }
  0xaf   :  { %3300 = vmatprep.subr.mxu1 %v3677_v0  ;;  %3311 = vmatprep.subr.mxu0 %v3677_v0 }
  0xb0   :  { %3301 = vmatpush3.msra.mxu1 %v3768_v24  ;;  %3312 = vmatpush3.msra.mxu0 %v3819_v54  ;;  %v3913_v24 = vand.u32 4294901760, %v1063_v18 }
  0xb1   :  { %3302 = vmatprep.subr.mxu1 %v3677_v0  ;;  %3313 = vmatprep.subr.mxu0 %v3677_v0 }
  0xb2   :  { %3303 = vmatpush3.msra.mxu1 %v3751_v14  ;;  %3314 = vmatpush3.msra.mxu0 %v3828_v57  ;;  %v1067_v14 = vmul.f32 %v1066_v10, %v3880_v9  ;;  %v1191_v28 = vsub.f32 %v1063_v18, %v3913_v24 }
  0xb3   :  { %3304 = vmatprep.subr.mxu1 %v3677_v0  ;;  %3315 = vmatprep.mubr.msk.f32.mxu0 %vm3679_vm0, %v3677_v0 }
  0xb4   :  { %3327 = vmatprep.subr.mxu0 %v3677_v0  ;;  %3305 = vmatpush3.msra.mxu1 %v3778_v31  ;;  %v3907_v21 = vand.u32 4294901760, %v1067_v14  ;;  %v1192_v32 = vand.u32 4294901760, %v1191_v28 }
  0xb5   :  { %3306 = vmatprep.mubr.msk.f32.mxu1 %vm3679_vm0, %v3677_v0  ;;  %3316 = vmatmul.mubr.f32.vlgmr.msra.gmra.mxu0 %v657_v1 }
  0xb6   :  { %3328 = vmatpush3.msra.mxu0 %v3826_v56  ;;  %3307 = vmatmul.mubr.f32.vlgmr.msra.gmra.mxu1 %v3754_v16  ;;  %v3897_v16 = vmul.f32 %v3766_v23, %v3868_v4  ;;  %v1184_v26 = vsub.f32 %v1067_v14, %v3907_v21  ;;  %v1193_v37 = vsub.f32 %v1191_v28, %v1192_v32 }
  0xb7   :  { %3318 = vmatprep.subr.mxu1 %v3677_v0  ;;  %3329 = vmatprep.subr.mxu0 %v3677_v0 }
  0xb8   :  { %3319 = vmatpush3.msra.mxu1 %v694_v8  ;;  %3330 = vmatpush3.msra.mxu0 %v3835_v58  ;;  %v1059_v22 = vmul.f32 %v1058_v19, %v3897_v16  ;;  %v1185_v30 = vand.u32 4294901760, %v1184_v26  ;;  %v1194_v41 = vand.u32 4294901760, %v1193_v37 }
  0xb9   :  { %3320 = vmatprep.subr.mxu1 %v3677_v0  ;;  %3331 = vmatprep.subr.mxu0 %v3677_v0 }
  0xba   :  { %3321 = vmatpush3.msra.mxu1 %v701_v12  ;;  %3332 = vmatpush3.msra.mxu0 %v3847_v62  ;;  %v3921_v27 = vand.u32 4294901760, %v1059_v22  ;;  %v1186_v35 = vsub.f32 %v1184_v26, %v1185_v30 }
  0xbb   :  { %3322 = vmatprep.subr.mxu1 %v3677_v0  ;;  %3333 = vmatprep.mubr.msk.f32.mxu0 %vm3679_vm0, %v3677_v0 }
  0xbc   :  { %3345 = vmatprep.subr.mxu0 %v3677_v0  ;;  %3323 = vmatpush3.msra.mxu1 %v708_v15  ;;  %v1198_v31 = vsub.f32 %v1059_v22, %v3921_v27  ;;  %v1187_v39 = vand.u32 4294901760, %v1186_v35 }
  0xbd   :  { %3324 = vmatprep.mubr.msk.f32.mxu1 %vm3679_vm0, %v3677_v0  ;;  %3334 = vmatmul.mubr.f32.vlgmr.msra.gmra.mxu0 %v3811_v51 }
  0xbe   :  { %3346 = vmatpush3.msra.mxu0 %v692_v61  ;;  %3325 = vmatmul.mubr.f32.vlgmr.msra.gmra.mxu1 %v3797_v45  ;;  %v1199_v36 = vand.u32 4294901760, %v1198_v31 }
  0xbf   :  { %3336 = vmatprep.subr.mxu1 %v3677_v0  ;;  %3347 = vmatprep.subr.mxu0 %v3677_v0 }
  0xc0   :  { %3337 = vmatpush3.msra.mxu1 %v3813_v52  ;;  %3348 = vmatpush3.msra.mxu0 %v699_v63  ;;  %v1200_v40 = vsub.f32 %v1198_v31, %v1199_v36 }
  0xc1   :  { %3338 = vmatprep.subr.mxu1 %v3677_v0  ;;  %3349 = vmatprep.subr.mxu0 %v3677_v0 }
  0xc2   :  { %3339 = vmatpush3.msra.mxu1 %v3819_v54  ;;  %3350 = vmatpush3.msra.mxu0 %v706_v3  ;;  %v1201_v42 = vand.u32 4294901760, %v1200_v40 }
  0xc3   :  { %3340 = vmatprep.subr.mxu1 %v3677_v0  ;;  %3351 = vmatprep.mubr.msk.f32.mxu0 %vm3679_vm0, %v3677_v0 }
  0xc4   :  { %3363 = vmatprep.subr.mxu0 %v3677_v0  ;;  %3341 = vmatpush3.msra.mxu1 %v3828_v57 }
  0xc5   :  { %3342 = vmatprep.mubr.msk.f32.mxu1 %vm3679_vm0, %v3677_v0  ;;  %3352 = vmatmul.mubr.f32.vlgmr.msra.gmra.mxu0 %v3797_v45 }
  0xc6   :  { %3364 = vmatpush3.msra.mxu0 %v3907_v21  ;;  %3343 = vmatmul.mubr.f32.vlgmr.msra.gmra.mxu1 %v655_v55 }
  0xc7   :  { %3354 = vmatprep.subr.mxu1 %v3677_v0  ;;  %3365 = vmatprep.subr.mxu0 %v3677_v0 }
  0xc8   :  { %3355 = vmatpush3.msra.mxu1 %v3813_v52  ;;  %3366 = vmatpush3.msra.mxu0 %v3913_v24 }
  0xc9   :  { %3356 = vmatprep.subr.mxu1 %v3677_v0  ;;  %3367 = vmatprep.subr.mxu0 %v3677_v0 }
  0xca   :  { %3357 = vmatpush3.msra.mxu1 %v3819_v54  ;;  %3368 = vmatpush3.msra.mxu0 %v3921_v27 }
  0xcb   :  { %3358 = vmatprep.subr.mxu1 %v3677_v0  ;;  %3369 = vmatprep.mubr.msk.f32.mxu0 %vm3679_vm0, %v3677_v0 }
  0xcc   :  { %3381 = vmatprep.subr.mxu0 %v3677_v0  ;;  %3359 = vmatpush3.msra.mxu1 %v3828_v57 }
  0xcd   :  { %3360 = vmatprep.mubr.msk.f32.mxu1 %vm3679_vm0, %v3677_v0  ;;  %3370 = vmatmul.mubr.f32.vlgmr.msra.gmra.mxu0 %v1150_v34 }
  0xce   :  { %3382 = vmatpush3.msra.mxu0 %v1184_v26  ;;  %3361 = vmatmul.mubr.f32.vlgmr.msra.gmra.mxu1 %v3797_v45 }
  0xcf   :  { %3372 = vmatprep.subr.mxu1 %v3677_v0  ;;  %3383 = vmatprep.subr.mxu0 %v3677_v0 }
  0xd0   :  { %3373 = vmatpush3.msra.mxu1 %v1187_v39  ;;  %3384 = vmatpush3.msra.mxu0 %v1191_v28 }
  0xd1   :  { %3374 = vmatprep.subr.mxu1 %v3677_v0  ;;  %3385 = vmatprep.subr.mxu0 %v3677_v0 }
  0xd2   :  { %3375 = vmatpush3.msra.mxu1 %v1194_v41  ;;  %3386 = vmatpush3.msra.mxu0 %v1198_v31 }
  0xd3   :  { %3387 = vmatprep.mubr.msk.f32.mxu0 %vm3679_vm0, %v3677_v0  ;;  %3376 = vmatprep.subr.mxu1 %v3677_v0 }
  0xd4   :  { %3388 = vmatmul.mubr.f32.vlgmr.msra.gmra.mxu0 %v3902_v20  ;;  %3399 = vmatprep.subr.mxu0 %v3677_v0 }
  0xd5   :  { %3377 = vmatpush3.msra.mxu1 %v1201_v42  ;;  %3378 = vmatprep.mubr.msk.f32.mxu1 %vm3679_vm0, %v3677_v0  ;;  %v3688_v42 = vmov 0  }
  0xd6   :  { %3400 = vmatpush3.msra.mxu0 %v1185_v30  ;;  %3379 = vmatmul.mubr.f32.vlgmr.msra.gmra.mxu1 %v3888_v13 }
  0xd7   :  { %3390 = vmatprep.subr.mxu1 %v3677_v0  ;;  %3401 = vmatprep.subr.mxu0 %v3677_v0 }
  0xd8   :  { %3391 = vmatpush3.msra.mxu1 %v3907_v21  ;;  %3402 = vmatpush3.msra.mxu0 %v1192_v32 }
  0xd9   :  { %3392 = vmatprep.subr.mxu1 %v3677_v0  ;;  %3403 = vmatprep.subr.mxu0 %v3677_v0 }
  0xda   :  { %3393 = vmatpush3.msra.mxu1 %v3913_v24  ;;  %3404 = vmatpush3.msra.mxu0 %v1199_v36 }
  0xdb   :  { %3405 = vmatprep.mubr.msk.f32.mxu0 %vm3679_vm0, %v3677_v0  ;;  %3394 = vmatprep.subr.mxu1 %v3677_v0 }
  0xdc   :  { %3406 = vmatmul.mubr.f32.vlgmr.msra.gmra.mxu0 %v3888_v13  ;;  %3395 = vmatpush3.msra.mxu1 %v3921_v27 }
  0xdd   :  { %3396 = vmatprep.mubr.msk.f32.mxu1 %vm3679_vm0, %v3677_v0  ;;  %3408 = vmatprep.subr.mxu1 %v3677_v0 }
  0xde   :  { %3397 = vmatmul.mubr.f32.vlgmr.msra.gmra.mxu1 %v1148_v25  ;;  %3417 = vmatprep.subr.mxu0 %v3677_v0 }
  0xdf   :  { %3409 = vmatpush3.msra.mxu1 %v3907_v21  ;;  %3414 = vmatprep.mubr.msk.f32.mxu1 %vm3679_vm0, %v3677_v0 }
  0xe0   :  { %3410 = vmatprep.subr.mxu1 %v3677_v0  ;;  %3423 = vmatprep.mubr.msk.f32.mxu0 %vm3679_vm0, %v3677_v0 }
  0xe1   :  { %3411 = vmatpush3.msra.mxu1 %v3913_v24  ;;  %3599 = vset.pattern.permute.xlu1 %v3688_v42 }
  0xe2   :  { %3412 = vmatprep.subr.mxu1 %v3677_v0 }
  0xe3   :  { %3413 = vmatpush3.msra.mxu1 %v3921_v27 }
  0xe4   :  { %3415 = vmatmul.mubr.f32.vlgmr.msra.gmra.mxu1 %v3888_v13  ;;  %3426 = vmatprep.subr.mxu1 %v3677_v0 }
  0xe5   :  { %3432 = vmatprep.mubr.msk.f32.mxu1 %vm3679_vm0, %v3677_v0 }
 0x15e   :  { %v184_v43 = vpop.f32.mrf.mxu0 }
 0x160   :  { %v3263_v44 = vpop.f32.mrf.mxu0 }
 0x164   :  { %v348_v45 = vpop.f32.mrf.mxu0 }
 0x166   :  { %v270_v46 = vpop.f32.mrf.mxu1  ;;  %v3281_v48 = vpop.f32.mrf.mxu0 }
 0x167   :  { %v271_v1 = vadd.f32 %v270_v46, %v184_v43 }
 0x168   :  { %v3272_v49 = vpop.f32.mrf.mxu1 }
 0x169   :  { %v349_v5 = vadd.f32 %v348_v45, %v271_v1 }
 0x16c   :  { %v504_v50 = vpop.f32.mrf.mxu0 }
 0x16e   :  { %v424_v51 = vpop.f32.mrf.mxu1  ;;  %v3299_v52 = vpop.f32.mrf.mxu0 }
 0x16f   :  { %v425_v6 = vadd.f32 %v424_v51, %v349_v5  ;;  %v3689_v52 = vmov 1  }
 0x170   :  { %v3290_v53 = vpop.f32.mrf.mxu1  ;;  %3600 = vset.pattern.permute.xlu0 %v3689_v52 }
 0x171   :  { %v505_v12 = vadd.f32 %v504_v50, %v425_v6  ;;  %v4000_v53 = vld [vmem:[%s4233_s3] sm:$0xff]  ;;  %s3692_s3 = smov [#allocation8]  }
 0x172   :  { %s3097_s11 = sshll.u32 %s3692_s3, 4  ;;  %s3098_s11 = int_to_ptr.vmem [resolvable:$true] %s3097_s11 }
 0x173   :  { %s3647_s12 = scalar_lea.vmem %s3098_s11, 128  ;;  %p3652_p11 = scmp.lt.s32.totalorder %s3098_s11, %s3098_s11 }
 0x174   :  { %p3648_p10 = scmp.ne.s32.totalorder %s3098_s11, %s3647_s12  ;;  %p3653_p12 = scmp.lt.s32.totalorder %s3647_s12, %s3647_s12 }
 0x175   :  { %v659_v54 = vpop.f32.mrf.mxu0 }
 0x176   :  { %v578_v55 = vpop.f32.mrf.mxu1  ;;  %p3654_p13 = por %p3653_p12, %p3652_p11 }
 0x177   :  { %v3317_v56 = vpop.f32.mrf.mxu0  ;;  %v579_v13 = vadd.f32 %v578_v55, %v505_v12 }
 0x178   :  { %v3308_v57 = vpop.f32.mrf.mxu1  ;;  %p3655_p0 = pnand %p3654_p13, %p3648_p10 }
 0x179   :  { %v660_v19 = vadd.f32 %v659_v54, %v579_v13 }
 0x17d   :  { %v823_v58 = vpop.f32.mrf.mxu0 }
 0x17e   :  { %v745_v59 = vpop.f32.mrf.mxu1 }
 0x17f   :  { %v3335_v60 = vpop.f32.mrf.mxu0  ;;  %v746_v21 = vadd.f32 %v745_v59, %v660_v19  ;;  %v1608_v59 = vld [vmem:[#allocation6] sm:$0xff] }
 0x180   :  { %v3326_v61 = vpop.f32.mrf.mxu1 }
 0x181   :  { %v824_v25 = vadd.f32 %v823_v58, %v746_v21 }
 0x185   :  { %v979_v62 = vpop.f32.mrf.mxu0 }
 0x186   :  { %v899_v63 = vpop.f32.mrf.mxu1 }
 0x187   :  { %v3353_v2 = vpop.f32.mrf.mxu0  ;;  %v900_v29 = vadd.f32 %v899_v63, %v824_v25 }
 0x188   :  { %v3344_v3 = vpop.f32.mrf.mxu1 }
 0x189   :  { %v980_v32 = vadd.f32 %v979_v62, %v900_v29 }
 0x18d   :  { %v1152_v7 = vpop.f32.mrf.mxu0 }
 0x18e   :  { %v1053_v8 = vpop.f32.mrf.mxu1 }
 0x18f   :  { %v3371_v10 = vpop.f32.mrf.mxu0  ;;  %v1054_v36 = vadd.f32 %v1053_v8, %v980_v32 }
 0x190   :  { %v3362_v11 = vpop.f32.mrf.mxu1 }
 0x194   :  { %v1316_v14 = vpop.f32.mrf.mxu0 }
 0x196   :  { %v1238_v15 = vpop.f32.mrf.mxu1  ;;  %v3389_v18 = vpop.f32.mrf.mxu0 }
 0x197   :  { %v1239_v22 = vadd.f32 %v1238_v15, %v1152_v7 }
 0x198   :  { %v3380_v20 = vpop.f32.mrf.mxu1 }
 0x199   :  { %v1317_v26 = vadd.f32 %v1316_v14, %v1239_v22 }
 0x19c   :  { %v1472_v24 = vpop.f32.mrf.mxu0 }
 0x19e   :  { %v1392_v27 = vpop.f32.mrf.mxu1  ;;  %v3407_v28 = vpop.f32.mrf.mxu0 }
 0x19f   :  { %v1393_v30 = vadd.f32 %v1392_v27, %v1317_v26  ;;  %v2090_v27 = vsel %vm107_vm1, %v1608_v59, 0 }
 0x1a0   :  { %v3398_v31 = vpop.f32.mrf.mxu1 }
 0x1a1   :  { %v1473_v34 = vadd.f32 %v1472_v24, %v1393_v30 }
 0x1a4   :  { %v1546_v35 = vpop.f32.mrf.mxu1 }
 0x1a5   :  { %v1547_v37 = vadd.f32 %v1546_v35, %v1473_v34  ;;  %v4046_v34 = vand.u32 4294901760, %v2090_v27 }
 0x1a6   :  { %v3416_v39 = vpop.f32.mrf.mxu1 }
 0x1a7   :  { %v1550_v40 = vadd.f32 %v1547_v37, %v1054_v36 }
 0x1a9   :  { %1551 = vadd.xlane.f32.xlu0 %v1550_v40  ;;  %v1554_v41 = vmul.f32 %v1550_v40, %v1550_v40 }
 0x1ab   :  { %1555 = vadd.xlane.f32.xlu1 %v1554_v41 }
 0x232   :  { %v1552_v43 = vpop.xlane.xlu0 %1551 }
 0x233   :  { %v1553_v44 = vmul.f32 0.0078125, %v1552_v43 }
 0x234   :  { %v1556_v45 = vpop.xlane.xlu1 %1555 }
 0x235   :  { %v1558_v46 = vmul.f32 %v1553_v44, %v1553_v44  ;;  %v1557_v48 = vmul.f32 0.0078125, %v1556_v45 }
 0x237   :  { %v1559_v49 = vsub.f32 %v1557_v48, %v1558_v46 }
 0x239   :  { %v1560_v50 = vmax.f32 %v1559_v49, 0.0 }
 0x23b   :  { %v1561_v51 = vadd.f32 1e-05, %v1560_v50 }
 0x23d   :  { %3603 = vrsqrt.f32 %v1561_v51 }
 0x24a   :  { %v3604_v54 = vpop.eup %3603 }
 0x24b   :  { %v1563_v55 = vmul.f32 %v3604_v54, %v4000_v53 }
 0x24d   :  { %1572 = vperm.xlu1 %3599, %v1563_v55   ;;  %v1564_v56 = vmul.f32 %v1563_v55, %v1553_v44 }
 0x24f   :  { %1566 = vrot.lane.b32.xlu0 %v1564_v56, %s3682_s29 }
 0x2c1   :  { %v1567_v57 = vpop.permute.xlu0 %1566 }
 0x2c2   :  { %v1569_v58 = vsub.f32 %v4000_v53, %v1567_v57 }
 0x2c4   :  { %1578 = vperm.xlu0 %3600, %v1569_v58  }
 0x2c8   :  { %1613 = vrot.lane.b32.xlu0 %v1608_v59, %s3678_s28  ;;  %v1573_v60 = vpop.permute.xlu1 %1572 }
 0x2c9   :  { %v1575_v61 = vmul.f32 %v1573_v60, %v1550_v40  ;;  %v4056_v40 = vsub.f32 %v2090_v27, %v4046_v34 }
 0x2cb   :  { %v2162_v42 = vand.u32 4294901760, %v4056_v40 }
 0x2cd   :  { %v2163_v45 = vsub.f32 %v4056_v40, %v2162_v42 }
 0x2cf   :  { %v2164_v51 = vand.u32 4294901760, %v2163_v45 }
 0x33f   :  { %v1579_v62 = vpop.permute.xlu0 %1578 }
 0x340   :  { %v1581_v63 = vadd.f32 %v1579_v62, %v1575_v61 }
 0x342   :  { %v1582_v1 = vmax.f32 %v1581_v63, 0.0 }
 0x343   :  { %v1614_v2 = vpop.permute.xlu0 %1613 }
 0x344   :  { %1587 = vrot.lane.b32.xlu0 %v1582_v1, %s3675_s19  ;;  %1604 = vrot.lane.b32.xlu1 %v1582_v1, %s3680_s1  ;;  %v1615_v3 = vsel %vm107_vm1, %v1614_v2, 0  ;;  %v4021_v7 = vand.u32 4294901760, %v1582_v1 }
 0x345   :  { %v4016_v5 = vand.u32 4294901760, %v1615_v3 }
 0x346   :  { %v1730_v12 = vsub.f32 %v1582_v1, %v4021_v7 }
 0x347   :  { %v4019_v6 = vsub.f32 %v1615_v3, %v4016_v5 }
 0x348   :  { %2572 = vrot.lane.b32.xlu0 %v1582_v1, %s3685_s6  ;;  %1599 = vrot.lane.b32.xlu1 %v1582_v1, %s3682_s29  ;;  %v1731_v20 = vand.u32 4294901760, %v1730_v12 }
 0x349   :  { %v1687_v8 = vand.u32 4294901760, %v4019_v6 }
 0x34b   :  { %v1688_v13 = vsub.f32 %v4019_v6, %v1687_v8 }
 0x34c   :  { %2564 = vrot.lane.b32.xlu0 %v1582_v1, %s3687_s8  ;;  %1591 = vrot.lane.b32.xlu1 %v1582_v1, %s3681_s2 }
 0x34d   :  { %v1689_v21 = vand.u32 4294901760, %v1688_v13 }
 0x350   :  { %1583 = vrot.lane.b32.xlu1 %v1582_v1, %s3683_s30 }
 0x354   :  { %2568 = vrot.lane.b32.xlu1 %v1582_v1, %s3684_s5 }
 0x358   :  { %2581 = vrot.lane.b32.xlu1 %v1608_v59, %s3686_s7 }
 0x3b6   :  { %v1605_v10 = vpop.permute.xlu1 %1604  ;;  %v1588_v30 = vpop.permute.xlu0 %1587 }
 0x3b7   :  { %v1606_v11 = vmul.f32 %v3757_v17, %v1605_v10  ;;  %v1589_v39 = vmul.f32 %v3782_v33, %v1588_v30 }
 0x3b9   :  { %v4029_v14 = vand.u32 4294901760, %v1606_v11  ;;  %v4064_v33 = vand.u32 4294901760, %v1589_v39 }
 0x3ba   :  { %v1600_v15 = vpop.permute.xlu1 %1599  ;;  %v2573_v57 = vpop.permute.xlu0 %2572 }
 0x3bb   :  { %v1723_v18 = vsub.f32 %v1606_v11, %v4029_v14  ;;  %v1601_v19 = vmul.f32 %v3766_v23, %v1600_v15  ;;  %3418 = vmatpush3.msra.mxu0 %v4029_v14  ;;  %v1732_v23 = vsub.f32 %v1730_v12, %v1731_v20  ;;  %v4080_v44 = vsub.f32 %v1589_v39, %v4064_v33 }
 0x3bc   :  { %3419 = vmatprep.subr.mxu0 %v3677_v0  ;;  %v2574_v63 = vmul.f32 %v2573_v57, %v3880_v9 }
 0x3bd   :  { %v1724_v17 = vand.u32 4294901760, %v1723_v18  ;;  %v4035_v22 = vand.u32 4294901760, %v1601_v19  ;;  %3420 = vmatpush3.msra.mxu0 %v4021_v7  ;;  %v1733_v32 = vand.u32 4294901760, %v1732_v23  ;;  %v2206_v50 = vand.u32 4294901760, %v4080_v44 }
 0x3be   :  { %3421 = vmatprep.subr.mxu0 %v3677_v0  ;;  %v1592_v26 = vpop.permute.xlu1 %1591  ;;  %v2565_v2 = vpop.permute.xlu0 %2564  ;;  %v4140_v9 = vand.u32 4294901760, %v2574_v63 }
 0x3bf   :  { %v1725_v24 = vsub.f32 %v1723_v18, %v1724_v17  ;;  %v1737_v25 = vsub.f32 %v1601_v19, %v4035_v22  ;;  %3422 = vmatpush3.msra.mxu0 %v4035_v22  ;;  %v1593_v35 = vmul.f32 %v1592_v26, %v3790_v38  ;;  %v2207_v56 = vsub.f32 %v4080_v44, %v2206_v50 }
 0x3c0   :  { %3435 = vmatprep.subr.mxu0 %v3677_v0  ;;  %3424 = vmatmul.mubr.f32.vlgmr.msra.gmra.mxu0 %v1689_v21 }
 0x3c1   :  { %v1738_v28 = vand.u32 4294901760, %v1737_v25  ;;  %3436 = vmatpush3.msra.mxu0 %v1723_v18  ;;  %v1726_v29 = vand.u32 4294901760, %v1725_v24  ;;  %3441 = vmatprep.mubr.msk.f32.mxu0 %vm3679_vm0, %v3677_v0  ;;  %v4058_v38 = vand.u32 4294901760, %v1593_v35  ;;  %v2208_v61 = vand.u32 4294901760, %v2207_v56 }
 0x3c2   :  { %3437 = vmatprep.subr.mxu0 %v3677_v0  ;;  %v1584_v36 = vpop.permute.xlu1 %1583 }
 0x3c3   :  { %v1739_v31 = vsub.f32 %v1737_v25, %v1738_v28  ;;  %3427 = vmatpush3.msra.mxu1 %v1726_v29  ;;  %3438 = vmatpush3.msra.mxu0 %v1730_v12  ;;  %v1585_v41 = vmul.f32 %v1584_v36, %v3804_v47  ;;  %v4071_v47 = vsub.f32 %v1593_v35, %v4058_v38 }
 0x3c4   :  { %3428 = vmatprep.subr.mxu1 %v3677_v0  ;;  %3439 = vmatprep.subr.mxu0 %v3677_v0 }
 0x3c5   :  { %3429 = vmatpush3.msra.mxu1 %v1733_v32  ;;  %3440 = vmatpush3.msra.mxu0 %v1737_v25  ;;  %v1740_v37 = vand.u32 4294901760, %v1739_v31  ;;  %v4073_v43 = vand.u32 4294901760, %v1585_v41  ;;  %v2199_v46 = vand.u32 4294901760, %v4071_v47 }
 0x3c6   :  { %3430 = vmatprep.subr.mxu1 %v3677_v0  ;;  %3442 = vmatmul.mubr.f32.vlgmr.msra.gmra.mxu0 %v4019_v6  ;;  %v2569_v49 = vpop.permute.xlu1 %2568  ;;  %v2566_v6 = vmul.f32 %v2565_v2, %v3897_v16 }
 0x3c7   :  { %3453 = vmatprep.subr.mxu0 %v3677_v0  ;;  %3431 = vmatpush3.msra.mxu1 %v1740_v37  ;;  %v4092_v48 = vsub.f32 %v1585_v41, %v4073_v43  ;;  %v2200_v52 = vsub.f32 %v4071_v47, %v2199_v46  ;;  %v2570_v3 = vmul.f32 %v3868_v4, %v2569_v49 }
 0x3c8   :  { %3454 = vmatpush3.msra.mxu0 %v1724_v17  ;;  %3433 = vmatmul.mubr.f32.vlgmr.msra.gmra.mxu1 %v4016_v5  ;;  %v4154_v16 = vand.u32 4294901760, %v2566_v6 }
 0x3c9   :  { %3444 = vmatprep.subr.mxu1 %v3677_v0  ;;  %3455 = vmatprep.subr.mxu0 %v3677_v0  ;;  %v2213_v54 = vand.u32 4294901760, %v4092_v48  ;;  %v2201_v59 = vand.u32 4294901760, %v2200_v52  ;;  %v4146_v4 = vand.u32 4294901760, %v2570_v3 }
 0x3ca   :  { %3445 = vmatpush3.msra.mxu1 %v4029_v14  ;;  %3456 = vmatpush3.msra.mxu0 %v1731_v20  ;;  %v2582_v55 = vpop.permute.xlu1 %2581  ;;  %v2705_v13 = vsub.f32 %v2566_v6, %v4154_v16 }
 0x3cb   :  { %3446 = vmatprep.subr.mxu1 %v3677_v0  ;;  %3457 = vmatprep.subr.mxu0 %v3677_v0  ;;  %v2214_v58 = vsub.f32 %v4092_v48, %v2213_v54  ;;  %v2583_v60 = vsel %vm107_vm1, %v2582_v55, 0  ;;  %v2698_v10 = vsub.f32 %v2570_v3, %v4146_v4 }
 0x3cc   :  { %3447 = vmatpush3.msra.mxu1 %v4021_v7  ;;  %3458 = vmatpush3.msra.mxu0 %v1738_v28  ;;  %v4125_v62 = vand.u32 4294901760, %v2583_v60  ;;  %v2706_v19 = vand.u32 4294901760, %v2705_v13 }
 0x3cd   :  { %3459 = vmatprep.mubr.msk.f32.mxu0 %vm3679_vm0, %v3677_v0  ;;  %3448 = vmatprep.subr.mxu1 %v3677_v0  ;;  %v2215_v1 = vand.u32 4294901760, %v2214_v58 }
 0x3ce   :  { %3460 = vmatmul.mubr.f32.vlgmr.msra.gmra.mxu0 %v4016_v5  ;;  %3471 = vmatprep.subr.mxu0 %v3677_v0  ;;  %v2707_v17 = vsub.f32 %v2705_v13, %v2706_v19 }
 0x3cf   :  { %3449 = vmatpush3.msra.mxu1 %v4035_v22  ;;  %3450 = vmatprep.mubr.msk.f32.mxu1 %vm3679_vm0, %v3677_v0 }
 0x3d0   :  { %3472 = vmatpush3.msra.mxu0 %v4058_v38  ;;  %3451 = vmatmul.mubr.f32.vlgmr.msra.gmra.mxu1 %v1687_v8  ;;  %v2691_v8 = vsub.f32 %v2574_v63, %v4140_v9  ;;  %v2708_v24 = vand.u32 4294901760, %v2707_v17 }
 0x3d1   :  { %3462 = vmatprep.subr.mxu1 %v3677_v0  ;;  %3473 = vmatprep.subr.mxu0 %v3677_v0 }
 0x3d2   :  { %3463 = vmatpush3.msra.mxu1 %v4029_v14  ;;  %3474 = vmatpush3.msra.mxu0 %v4064_v33  ;;  %v2692_v12 = vand.u32 4294901760, %v2691_v8  ;;  %v2699_v14 = vand.u32 4294901760, %v2698_v10 }
 0x3d3   :  { %3464 = vmatprep.subr.mxu1 %v3677_v0  ;;  %3475 = vmatprep.subr.mxu0 %v3677_v0 }
 0x3d4   :  { %3465 = vmatpush3.msra.mxu1 %v4021_v7  ;;  %3476 = vmatpush3.msra.mxu0 %v4073_v43  ;;  %v2693_v18 = vsub.f32 %v2691_v8, %v2692_v12  ;;  %v2700_v20 = vsub.f32 %v2698_v10, %v2699_v14 }
 0x3d5   :  { %3466 = vmatprep.subr.mxu1 %v3677_v0  ;;  %3477 = vmatprep.mubr.msk.f32.mxu0 %vm3679_vm0, %v3677_v0 }
 0x3d6   :  { %3489 = vmatprep.subr.mxu0 %v3677_v0  ;;  %3467 = vmatpush3.msra.mxu1 %v4035_v22  ;;  %v2694_v21 = vand.u32 4294901760, %v2693_v18  ;;  %v2701_v22 = vand.u32 4294901760, %v2700_v20 }
 0x3d7   :  { %3468 = vmatprep.mubr.msk.f32.mxu1 %vm3679_vm0, %v3677_v0  ;;  %3478 = vmatmul.mubr.f32.vlgmr.msra.gmra.mxu0 %v2164_v51 }
 0x3d8   :  { %3490 = vmatpush3.msra.mxu0 %v4071_v47  ;;  %3469 = vmatmul.mubr.f32.vlgmr.msra.gmra.mxu1 %v4016_v5  ;;  %v4135_v5 = vsub.f32 %v2583_v60, %v4125_v62 }
 0x3d9   :  { %3480 = vmatprep.subr.mxu1 %v3677_v0  ;;  %3491 = vmatprep.subr.mxu0 %v3677_v0 }
 0x3da   :  { %3481 = vmatpush3.msra.mxu1 %v2201_v59  ;;  %3492 = vmatpush3.msra.mxu0 %v4080_v44  ;;  %v2655_v7 = vand.u32 4294901760, %v4135_v5 }
 0x3db   :  { %3482 = vmatprep.subr.mxu1 %v3677_v0  ;;  %3493 = vmatprep.subr.mxu0 %v3677_v0 }
 0x3dc   :  { %3483 = vmatpush3.msra.mxu1 %v2208_v61  ;;  %3494 = vmatpush3.msra.mxu0 %v4092_v48  ;;  %v2656_v11 = vsub.f32 %v4135_v5, %v2655_v7 }
 0x3dd   :  { %3484 = vmatprep.subr.mxu1 %v3677_v0  ;;  %3495 = vmatprep.mubr.msk.f32.mxu0 %vm3679_vm0, %v3677_v0 }
 0x3de   :  { %3507 = vmatprep.subr.mxu0 %v3677_v0  ;;  %3485 = vmatpush3.msra.mxu1 %v2215_v1  ;;  %v2657_v15 = vand.u32 4294901760, %v2656_v11 }
 0x3df   :  { %3486 = vmatprep.mubr.msk.f32.mxu1 %vm3679_vm0, %v3677_v0  ;;  %3496 = vmatmul.mubr.f32.vlgmr.msra.gmra.mxu0 %v4056_v40 }
 0x3e0   :  { %3508 = vmatpush3.msra.mxu0 %v2199_v46  ;;  %3487 = vmatmul.mubr.f32.vlgmr.msra.gmra.mxu1 %v4046_v34 }
 0x3e1   :  { %3498 = vmatprep.subr.mxu1 %v3677_v0  ;;  %3509 = vmatprep.subr.mxu0 %v3677_v0 }
 0x3e2   :  { %3499 = vmatpush3.msra.mxu1 %v4058_v38  ;;  %3510 = vmatpush3.msra.mxu0 %v2206_v50 }
 0x3e3   :  { %3500 = vmatprep.subr.mxu1 %v3677_v0  ;;  %3511 = vmatprep.subr.mxu0 %v3677_v0 }
 0x3e4   :  { %3501 = vmatpush3.msra.mxu1 %v4064_v33  ;;  %3512 = vmatpush3.msra.mxu0 %v2213_v54 }
 0x3e5   :  { %3502 = vmatprep.subr.mxu1 %v3677_v0  ;;  %3513 = vmatprep.mubr.msk.f32.mxu0 %vm3679_vm0, %v3677_v0 }
 0x3e6   :  { %3525 = vmatprep.subr.mxu0 %v3677_v0  ;;  %3503 = vmatpush3.msra.mxu1 %v4073_v43 }
 0x3e7   :  { %3504 = vmatprep.mubr.msk.f32.mxu1 %vm3679_vm0, %v3677_v0  ;;  %3514 = vmatmul.mubr.f32.vlgmr.msra.gmra.mxu0 %v4046_v34 }
 0x3e8   :  { %3526 = vmatpush3.msra.mxu0 %v4140_v9  ;;  %3505 = vmatmul.mubr.f32.vlgmr.msra.gmra.mxu1 %v2162_v42 }
 0x3e9   :  { %3516 = vmatprep.subr.mxu1 %v3677_v0  ;;  %3527 = vmatprep.subr.mxu0 %v3677_v0 }
 0x3ea   :  { %3517 = vmatpush3.msra.mxu1 %v4058_v38  ;;  %3528 = vmatpush3.msra.mxu0 %v4146_v4 }
 0x3eb   :  { %3518 = vmatprep.subr.mxu1 %v3677_v0  ;;  %3529 = vmatprep.subr.mxu0 %v3677_v0 }
 0x3ec   :  { %3519 = vmatpush3.msra.mxu1 %v4064_v33  ;;  %3530 = vmatpush3.msra.mxu0 %v4154_v16 }
 0x3ed   :  { %3520 = vmatprep.subr.mxu1 %v3677_v0  ;;  %3531 = vmatprep.mubr.msk.f32.mxu0 %vm3679_vm0, %v3677_v0 }
 0x3ee   :  { %3543 = vmatprep.subr.mxu0 %v3677_v0  ;;  %3521 = vmatpush3.msra.mxu1 %v4073_v43 }
 0x3ef   :  { %3522 = vmatprep.mubr.msk.f32.mxu1 %vm3679_vm0, %v3677_v0  ;;  %3532 = vmatmul.mubr.f32.vlgmr.msra.gmra.mxu0 %v2657_v15 }
 0x3f0   :  { %3544 = vmatpush3.msra.mxu0 %v2691_v8  ;;  %3523 = vmatmul.mubr.f32.vlgmr.msra.gmra.mxu1 %v4046_v34 }
 0x3f1   :  { %3534 = vmatprep.subr.mxu1 %v3677_v0  ;;  %3545 = vmatprep.subr.mxu0 %v3677_v0 }
 0x3f2   :  { %3535 = vmatpush3.msra.mxu1 %v2694_v21  ;;  %3546 = vmatpush3.msra.mxu0 %v2698_v10 }
 0x3f3   :  { %3536 = vmatprep.subr.mxu1 %v3677_v0  ;;  %3547 = vmatprep.subr.mxu0 %v3677_v0 }
 0x3f4   :  { %3537 = vmatpush3.msra.mxu1 %v2701_v22  ;;  %3548 = vmatpush3.msra.mxu0 %v2705_v13 }
 0x3f5   :  { %3549 = vmatprep.mubr.msk.f32.mxu0 %vm3679_vm0, %v3677_v0  ;;  %3538 = vmatprep.subr.mxu1 %v3677_v0 }
 0x3f6   :  { %3550 = vmatmul.mubr.f32.vlgmr.msra.gmra.mxu0 %v4135_v5  ;;  %3561 = vmatprep.subr.mxu0 %v3677_v0 }
 0x3f7   :  { %3539 = vmatpush3.msra.mxu1 %v2708_v24  ;;  %3540 = vmatprep.mubr.msk.f32.mxu1 %vm3679_vm0, %v3677_v0 }
 0x3f8   :  { %3562 = vmatpush3.msra.mxu0 %v2692_v12  ;;  %3541 = vmatmul.mubr.f32.vlgmr.msra.gmra.mxu1 %v4125_v62 }
 0x3f9   :  { %3552 = vmatprep.subr.mxu1 %v3677_v0  ;;  %3563 = vmatprep.subr.mxu0 %v3677_v0 }
 0x3fa   :  { %3553 = vmatpush3.msra.mxu1 %v4140_v9  ;;  %3564 = vmatpush3.msra.mxu0 %v2699_v14  ;;  %v3690_v14 = vmov 2  }
 0x3fb   :  { %3554 = vmatprep.subr.mxu1 %v3677_v0  ;;  %3565 = vmatprep.subr.mxu0 %v3677_v0 }
 0x3fc   :  { %3555 = vmatpush3.msra.mxu1 %v4146_v4  ;;  %3566 = vmatpush3.msra.mxu0 %v2706_v19 }
 0x3fd   :  { %3567 = vmatprep.mubr.msk.f32.mxu0 %vm3679_vm0, %v3677_v0  ;;  %3556 = vmatprep.subr.mxu1 %v3677_v0 }
 0x3fe   :  { %3568 = vmatmul.mubr.f32.vlgmr.msra.gmra.mxu0 %v4125_v62  ;;  %3557 = vmatpush3.msra.mxu1 %v4154_v16 }
 0x3ff   :  { %3558 = vmatprep.mubr.msk.f32.mxu1 %vm3679_vm0, %v3677_v0  ;;  %3570 = vmatprep.subr.mxu1 %v3677_v0 }
 0x400   :  { %3559 = vmatmul.mubr.f32.vlgmr.msra.gmra.mxu1 %v2655_v7  ;;  %3601 = vset.pattern.permute.xlu1 %v3690_v14 }
 0x401   :  { %3571 = vmatpush3.msra.mxu1 %v4140_v9  ;;  %3576 = vmatprep.mubr.msk.f32.mxu1 %vm3679_vm0, %v3677_v0 }
 0x402   :  { %3572 = vmatprep.subr.mxu1 %v3677_v0 }
 0x403   :  { %3573 = vmatpush3.msra.mxu1 %v4146_v4 }
 0x404   :  { %3574 = vmatprep.subr.mxu1 %v3677_v0 }
 0x405   :  { %3575 = vmatpush3.msra.mxu1 %v4154_v16 }
 0x406   :  { %3577 = vmatmul.mubr.f32.vlgmr.msra.gmra.mxu1 %v4125_v62 }
 0x480   :  { %v1691_v25 = vpop.f32.mrf.mxu0 }
 0x482   :  { %v3425_v26 = vpop.f32.mrf.mxu0 }
 0x486   :  { %v1855_v23 = vpop.f32.mrf.mxu0 }
 0x488   :  { %v1777_v27 = vpop.f32.mrf.mxu1  ;;  %v3443_v28 = vpop.f32.mrf.mxu0 }
 0x489   :  { %v1778_v47 = vadd.f32 %v1777_v27, %v1691_v25  ;;  %v3691_v25 = vmov 3  }
 0x48a   :  { %v3434_v29 = vpop.f32.mrf.mxu1  ;;  %3602 = vset.pattern.permute.xlu0 %v3691_v25 }
 0x48b   :  { %v1856_v45 = vadd.f32 %v1855_v23, %v1778_v47 }
 0x48e   :  { %v2011_v30 = vpop.f32.mrf.mxu0 }
 0x490   :  { %v1931_v31 = vpop.f32.mrf.mxu1  ;;  %v3461_v32 = vpop.f32.mrf.mxu0 }
 0x491   :  { %v1932_v46 = vadd.f32 %v1931_v31, %v1856_v45 }
 0x492   :  { %v3452_v34 = vpop.f32.mrf.mxu1 }
 0x493   :  { %v2012_v52 = vadd.f32 %v2011_v30, %v1932_v46 }
 0x497   :  { %v2166_v35 = vpop.f32.mrf.mxu0 }
 0x498   :  { %v2085_v36 = vpop.f32.mrf.mxu1 }
 0x499   :  { %v3479_v37 = vpop.f32.mrf.mxu0  ;;  %v2086_v54 = vadd.f32 %v2085_v36, %v2012_v52 }
 0x49a   :  { %v3470_v39 = vpop.f32.mrf.mxu1 }
 0x49b   :  { %v2167_v58 = vadd.f32 %v2166_v35, %v2086_v54 }
 0x49f   :  { %v2330_v40 = vpop.f32.mrf.mxu0 }
 0x4a0   :  { %v2252_v0 = vpop.f32.mrf.mxu1 }
 0x4a1   :  { %v3497_v38 = vpop.f32.mrf.mxu0  ;;  %v2253_v60 = vadd.f32 %v2252_v0, %v2167_v58 }
 0x4a2   :  { %v3488_v41 = vpop.f32.mrf.mxu1 }
 0x4a3   :  { %v2331_v63 = vadd.f32 %v2330_v40, %v2253_v60 }
 0x4a7   :  { %v2486_v33 = vpop.f32.mrf.mxu0 }
 0x4a8   :  { %v2406_v42 = vpop.f32.mrf.mxu1 }
 0x4a9   :  { %v3515_v43 = vpop.f32.mrf.mxu0  ;;  %v2407_v5 = vadd.f32 %v2406_v42, %v2331_v63 }
 0x4aa   :  { %v3506_v44 = vpop.f32.mrf.mxu1 }
 0x4ab   :  { %v2487_v4 = vadd.f32 %v2486_v33, %v2407_v5 }
 0x4af   :  { %v2659_v48 = vpop.f32.mrf.mxu0 }
 0x4b0   :  { %v2560_v49 = vpop.f32.mrf.mxu1 }
 0x4b1   :  { %v3533_v50 = vpop.f32.mrf.mxu0  ;;  %v2561_v16 = vadd.f32 %v2560_v49, %v2487_v4 }
 0x4b2   :  { %v3524_v51 = vpop.f32.mrf.mxu1 }
 0x4b6   :  { %v2823_v55 = vpop.f32.mrf.mxu0 }
 0x4b8   :  { %v2745_v56 = vpop.f32.mrf.mxu1  ;;  %v3551_v57 = vpop.f32.mrf.mxu0 }
 0x4b9   :  { %v2746_v61 = vadd.f32 %v2745_v56, %v2659_v48 }
 0x4ba   :  { %v3542_v59 = vpop.f32.mrf.mxu1 }
 0x4bb   :  { %v2824_v1 = vadd.f32 %v2823_v55, %v2746_v61 }
 0x4be   :  { %v2979_v62 = vpop.f32.mrf.mxu0 }
 0x4c0   :  { %v2899_v2 = vpop.f32.mrf.mxu1  ;;  %v3569_v3 = vpop.f32.mrf.mxu0 }
 0x4c1   :  { %v2900_v9 = vadd.f32 %v2899_v2, %v2824_v1 }
 0x4c2   :  { %v3560_v6 = vpop.f32.mrf.mxu1 }
 0x4c3   :  { %v2980_v7 = vadd.f32 %v2979_v62, %v2900_v9 }
 0x4c6   :  { %v3053_v8 = vpop.f32.mrf.mxu1 }
 0x4c7   :  { %v3054_v10 = vadd.f32 %v3053_v8, %v2980_v7 }
 0x4c8   :  { %v3578_v11 = vpop.f32.mrf.mxu1 }
 0x4c9   :  { %v3057_v12 = vadd.f32 %v3054_v10, %v2561_v16 }
 0x4cb   :  { %3058 = vadd.xlane.f32.xlu0 %v3057_v12  ;;  %v3061_v13 = vmul.f32 %v3057_v12, %v3057_v12 }
 0x4cd   :  { %3062 = vadd.xlane.f32.xlu1 %v3061_v13 }
 0x554   :  { %v3059_v15 = vpop.xlane.xlu0 %3058 }
 0x555   :  { %v3060_v18 = vmul.f32 0.0078125, %v3059_v15 }
 0x556   :  { %v3063_v19 = vpop.xlane.xlu1 %3062 }
 0x557   :  { %v3065_v20 = vmul.f32 %v3060_v18, %v3060_v18  ;;  %v3064_v21 = vmul.f32 0.0078125, %v3063_v19 }
 0x559   :  { %v3066_v17 = vsub.f32 %v3064_v21, %v3065_v20 }
 0x55b   :  { %v3067_v22 = vmax.f32 %v3066_v17, 0.0 }
 0x55d   :  { %v3068_v24 = vadd.f32 1e-05, %v3067_v22 }
 0x55f   :  { %3605 = vrsqrt.f32 %v3068_v24 }
 0x56c   :  { %v3606_v26 = vpop.eup %3605 }
 0x56d   :  { %v3070_v23 = vmul.f32 %v3606_v26, %v4000_v53 }
 0x56f   :  { %3079 = vperm.xlu1 %3601, %v3070_v23   ;;  %v3071_v27 = vmul.f32 %v3070_v23, %v3060_v18 }
 0x571   :  { %3073 = vrot.lane.b32.xlu0 %v3071_v27, %s3682_s29 }
 0x5e3   :  { %v3074_v28 = vpop.permute.xlu0 %3073 }
 0x5e4   :  { %v3076_v29 = vsub.f32 %v4000_v53, %v3074_v28 }
 0x5e6   :  { %3085 = vperm.xlu0 %3602, %v3076_v29  }
 0x5ea   :  { %v3080_v30 = vpop.permute.xlu1 %3079 }
 0x5eb   :  { %v3082_v31 = vmul.f32 %v3080_v30, %v3057_v12 }
 0x661   :  { %v3086_v32 = vpop.permute.xlu0 %3085 }
 0x662   :  { %v3088_v34 = vadd.f32 %v3086_v32, %v3082_v31 }
 0x664   :  { %v3089_v35 = vmax.f32 %v3088_v34, 0.0 }
 0x666   :  { %3090 = vst [vmem:[#allocation8] sm:$0xff] %v3089_v35 }
 0x667   :  { %3658 = shalt.err (!%p3655_p0)
}
 0x668   :  { %3100 = dma.vmem_to_hbm [thread:$0]  %s3098_s11, 128, %s4234_s4, [#allocation5]  }
 0x669   :  { %3671 = dma.done.wait [#allocation5], 128  }
 0x66a   :  { %3672 = vsyncadd [#allocation5], 4294967168 }
 0x66b   :  { %3104 = vsyncpa [#allocation4], 1 }
 0x66c   :  { %3105 = vsyncpa [#allocation7], 1 }
 0x66d   :  { %3106 = vsyncpa [#allocation5], 1 }

</bundles_post_ra>
